<compile_context>
chip_gen: v5e
topology: v5e:2x2
jax: 0.10.0
libtpu: 0.0.40
codegen_flags: <defaults>
</compile_context>

<pallas_src>
import jax
import jax.numpy as jnp
from jax import lax
from jax.experimental import pallas as pl
from jax.experimental.pallas import tpu as pltpu

N = 8          # number of samples (rows)
N2 = 2 * N
F = 32         # fc3 in/out features
CDIM = 3       # colorlabel feature dim

_EPS_NORM_SQ = 1e-24   # == (F.normalize eps 1e-12)^2 applied to the sum of squares
_EPS_LOG = 1e-7
_RWR_C = 0.5           # restart probability `c` in propogation()


def _dot_nt(a, b):
    """a @ b.T without materializing the transpose (MXU NT form)."""
    return lax.dot_general(a, b, (((1,), (1,)), ((), ())),
                           preferred_element_type=jnp.float32)


def _recip(x):
    """EUP approx reciprocal + one Newton step (~f32 accurate)."""
    r = pl.reciprocal(x, approx=True)
    return r * (2.0 - x * r)


def _mi_s_kernel(x_ref, wb_ref, mask_ref, hyp_ref, loss_ref, a_ref):
    t1 = hyp_ref[0]     # knnt1
    t2 = hyp_ref[1]     # knnt2
    wpos = hyp_ref[2]   # post
    wneg = hyp_ref[3]   # negt

    rows = lax.broadcasted_iota(jnp.int32, (N2, 1), 0)    # (16,1)
    half = rows < N                                       # rows 0..7 = cls, 8..15 = bias
    rows_mod = rows & (N - 1)

    # ---- fused fc3_cls / fc3_bias + L2 row-normalize: 1 matmul, 1 rsqrt ----
    x = x_ref[...]                          # (16,32) = [feaClass ; feaBias]
    wb = wb_ref[...]                        # (66,32) = [Wc ; Wb ; bc ; bb] (PyTorch (out,in) layout)
    yw = _dot_nt(x, wb[0:2 * F, :])         # (16,64) = [x @ Wc.T | x @ Wb.T]
    y = (jnp.where(half, yw[:, 0:F], yw[:, F:2 * F])
         + jnp.where(half, wb[2 * F:2 * F + 1, :], wb[2 * F + 1:2 * F + 2, :]))
    ssq = jnp.sum(y * y, axis=1, keepdims=True)
    g = y * lax.rsqrt(jnp.maximum(ssq, _EPS_NORM_SQ))     # (16,32) = [feacls ; feabias]

    # ---- single stacked Gram: all three NxN products in one MXU pass ----
    gg = _dot_nt(g, g)                      # (16,16)
    A = gg[0:N, N:N2]                       # feacls @ feabias.T
    a_ref[...] = A

    # ---- both softmax-symmetrized graphs in one stacked pass ----
    s = jnp.concatenate([t1 * gg[0:N, 0:N], t2 * gg[N:N2, N:N2]], axis=0)  # (16,8)
    s = s - jnp.max(s, axis=1, keepdims=True)
    e = jnp.exp(s)
    p = e * _recip(jnp.sum(e, axis=1, keepdims=True))
    p1 = p[0:N, :]
    p2 = p[N:N2, :]
    acls = (p1 + p1.T) * 0.5
    abias = (p2 + p2.T) * 0.5
    astack = jnp.concatenate([acls, abias], axis=0)       # (16,8)

    # ---- batched RWR solve: Gauss-Jordan on both augmented systems at once ----
    # rows 0..7  : [I - c*Acls  | I]      rows 8..15 : [I - c*Abias | I]
    # After 8 elimination steps the right half holds both inverses.
    # TODO(synk): no partial pivoting (torch.inverse uses pivoted LU); safe for
    # these diagonally-dominant softmax-derived graphs.
    r8 = lax.broadcasted_iota(jnp.int32, (N2, N), 0)
    c8 = lax.broadcasted_iota(jnp.int32, (N2, N), 1)
    e8 = ((r8 & (N - 1)) == c8).astype(jnp.float32)       # stacked identity (16,8)
    aug = jnp.concatenate([e8 - _RWR_C * astack, e8], axis=1)   # (16,16)

    for k in range(N):
        pr = jnp.where(half, aug[k:k + 1, :], aug[N + k:N + k + 1, :])  # per-half pivot row
        piv = pr[:, k:k + 1]                                            # both pivots (lane k)
        prn = pr * _recip(piv)
        col = aug[:, k:k + 1]                                           # elimination multipliers
        aug = jnp.where(rows_mod == k, prn, aug - col * prn)

    ak = (1.0 - _RWR_C) * aug[:, N:N2]      # stacked inverses -> RWR kernels (16,8)
    a1 = ak[0:N, :]
    a2 = ak[N:N2, :]
    a1 = (a1 + a1.T) * 0.5
    a2 = (a2 + a2.T) * 0.5
    aks = jnp.concatenate([a1, a2], axis=0)               # (16,8)
    akn = aks * _recip(jnp.sum(aks, axis=1, keepdims=True))   # row-stochastic
    la = jnp.log(akn + _EPS_LOG)
    lsw = jnp.concatenate([la[N:N2, :], la[0:N, :]], axis=0)  # swap halves

    # both cross-entropy matmuls in one MXU pass; take the two diagonal blocks
    R = _dot_nt(akn, lsw)                                 # (16,16)
    a_clsbias = 0.5 * (R[0:N, 0:N] + R[N:N2, N:N2])

    # ---- masked-exp loss, stacked exp ----
    z = a_clsbias + A
    m = mask_ref[...]                                     # 1.0 where color-dist^2 < 4 else 0.0
    zs = jnp.concatenate([-wpos * z, wneg * z], axis=0)   # (16,8)
    ms = jnp.concatenate([m, 1.0 - m], axis=0)
    ez = ms * jnp.exp(zs)
    sum_pos = jnp.sum(ez[0:N, :])
    sum_neg = jnp.sum(ez[N:N2, :])

    loss = jnp.log(1.0 + sum_pos) / wpos + jnp.log(1.0 + sum_neg) / wneg
    loss_ref[...] = jnp.broadcast_to(loss, (1, 1)).astype(jnp.float32)


def mi_s_forward(feaClass, feaBias, label, colorlabel, params, adv=False):
    del label  # unused by the reference forward as well
    Wc, bc, Wb, bb, knnt1, knnt2, negt, post = params

    # (N, N) color-distance mask, constant w.r.t. kernel outputs.
    cl = colorlabel.astype(jnp.float32)
    diff = cl[None, :, :] - cl[:, None, :]
    mask = (jnp.sum(diff * diff, axis=2) < 4.0).astype(jnp.float32)

    # Coalesced operands (3 VMEM + 1 SMEM instead of 7 VMEM + 1 SMEM).
    x = jnp.concatenate([feaClass, feaBias], axis=0).astype(jnp.float32)      # (16,32)
    wbpack = jnp.concatenate(
        [Wc, Wb, bc.reshape(1, F), bb.reshape(1, F)], axis=0).astype(jnp.float32)  # (66,32)
    hyp = jnp.concatenate([knnt1, knnt2, post, negt]).astype(jnp.float32)     # (4,)

    vspec = pl.BlockSpec(memory_space=pltpu.MemorySpace.VMEM)
    sspec = pl.BlockSpec(memory_space=pltpu.MemorySpace.SMEM)

    loss2d, A = pl.pallas_call(
        _mi_s_kernel,
        out_shape=(jax.ShapeDtypeStruct((1, 1), jnp.float32),
                   jax.ShapeDtypeStruct((N, N), jnp.float32)),
        in_specs=[vspec, vspec, vspec, sspec],
        out_specs=(vspec, vspec),
    )(x, wbpack, mask, hyp)

    loss_MI = loss2d[0, 0]
    loss_advMI = -loss_MI if adv else 0.0
    return loss_MI, A, loss_advMI


def init_params(key, tau=2.0, alpha=1.0):
    k1, k2, k3, k4 = jax.random.split(key, 4)
    std = jnp.sqrt(2.0 / F)          # kaiming_normal_, a=0, fan_in
    bound = 1.0 / jnp.sqrt(F)        # PyTorch Linear default bias init
    Wc = jax.random.normal(k1, (F, F), jnp.float32) * std
    bc = jax.random.uniform(k2, (F,), jnp.float32, -bound, bound)
    Wb = jax.random.normal(k3, (F, F), jnp.float32) * std
    bb = jax.random.uniform(k4, (F,), jnp.float32, -bound, bound)
    knnt1 = jnp.array([tau], jnp.float32)
    knnt2 = jnp.array([tau], jnp.float32)
    negt = jnp.array([alpha], jnp.float32)
    post = jnp.array([alpha], jnp.float32)
    return (Wc, bc, Wb, bb, knnt1, knnt2, negt, post)


if __name__ == "__main__":
    key = jax.random.PRNGKey(0)
    kp, kf1, kf2, kl, kc = jax.random.split(key, 5)

    params = init_params(kp)
    feaClass = jax.random.normal(kf1, (N, F), jnp.float32)
    feaBias = jax.random.normal(kf2, (N, F), jnp.float32)
    label = jax.random.randint(kl, (N,), 0, 4)                    # unused by forward
    colorlabel = jax.random.randint(kc, (N, CDIM), 0, 3).astype(jnp.float32)

    loss_MI, A, loss_advMI = mi_s_forward(
        feaClass, feaBias, label, colorlabel, params, adv=False)

    jax.block_until_ready((loss_MI, A))
    assert A.shape == (N, N)
    assert bool(jnp.all(jnp.isfinite(A)))
    assert jnp.isfinite(loss_MI)
    print("KERNEL_OK")
</pallas_src>

<mosaic_0001>
module attributes {stable_mosaic.version = 11 : i64} {
  func.func @_mi_s_kernel(%arg0: memref<16x32xf32, #tpu.memory_space<vmem>>, %arg1: memref<66x32xf32, #tpu.memory_space<vmem>>, %arg2: memref<8x8xf32, #tpu.memory_space<vmem>>, %arg3: memref<4xf32, #tpu.memory_space<smem>>, %arg4: memref<1x1xf32, #tpu.memory_space<vmem>>, %arg5: memref<8x8xf32, #tpu.memory_space<vmem>>) attributes {dimension_semantics = [], scalar_prefetch = 0 : i64, scratch_operands = 0 : i64, tpu.core_type = #tpu.core_type<tc>} {
    %c0 = arith.constant 0 : index
    %0 = memref.load %arg3[%c0] : memref<4xf32, #tpu.memory_space<smem>>
    %c1 = arith.constant 1 : index
    %1 = memref.load %arg3[%c1] : memref<4xf32, #tpu.memory_space<smem>>
    %c2 = arith.constant 2 : index
    %2 = memref.load %arg3[%c2] : memref<4xf32, #tpu.memory_space<smem>>
    %c3 = arith.constant 3 : index
    %3 = memref.load %arg3[%c3] : memref<4xf32, #tpu.memory_space<smem>>
    %4 = tpu.iota {dimensions = array<i32: 0>} : vector<16x1xi32>
    %c8_i32 = arith.constant 8 : i32
    %5 = vector.broadcast %c8_i32 : i32 to vector<16x1xi32>
    %6 = arith.cmpi slt, %4, %5 : vector<16x1xi32>
    %c7_i32 = arith.constant 7 : i32
    %7 = vector.broadcast %c7_i32 : i32 to vector<16x1xi32>
    %8 = arith.andi %4, %7 : vector<16x1xi32>
    %c0_0 = arith.constant 0 : index
    %c0_1 = arith.constant 0 : index
    %9 = vector.load %arg0[%c0_0, %c0_1] : memref<16x32xf32, #tpu.memory_space<vmem>>, vector<16x32xf32>
    %c0_2 = arith.constant 0 : index
    %c0_3 = arith.constant 0 : index
    %10 = vector.load %arg1[%c0_2, %c0_3] : memref<66x32xf32, #tpu.memory_space<vmem>>, vector<66x32xf32>
    %11 = vector.extract_strided_slice %10 {offsets = [0, 0], sizes = [64, 32], strides = [1, 1]} : vector<66x32xf32> to vector<64x32xf32>
    %cst = arith.constant dense<0.000000e+00> : vector<16x64xf32>
    %12 = tpu.matmul %9, %11, %cst {dimension_numbers = #tpu.dot_dimension_numbers<[1], [1], [0], [0], [0, 0, 1, 0], [], []>} : vector<16x32xf32>, vector<64x32xf32>, vector<16x64xf32> -> vector<16x64xf32>
    %13 = vector.extract_strided_slice %12 {offsets = [0, 0], sizes = [16, 32], strides = [1, 1]} : vector<16x64xf32> to vector<16x32xf32>
    %14 = vector.extract_strided_slice %12 {offsets = [0, 32], sizes = [16, 32], strides = [1, 1]} : vector<16x64xf32> to vector<16x32xf32>
    %15 = vector.shape_cast %6 : vector<16x1xi1> to vector<16x1xi1>
    %16 = vector.broadcast %15 : vector<16x1xi1> to vector<16x32xi1>
    %17 = arith.select %16, %13, %14 : vector<16x32xi1>, vector<16x32xf32>
    %18 = vector.extract_strided_slice %10 {offsets = [64, 0], sizes = [1, 32], strides = [1, 1]} : vector<66x32xf32> to vector<1x32xf32>
    %19 = vector.extract_strided_slice %10 {offsets = [65, 0], sizes = [1, 32], strides = [1, 1]} : vector<66x32xf32> to vector<1x32xf32>
    %20 = vector.shape_cast %6 : vector<16x1xi1> to vector<16x1xi1>
    %21 = vector.broadcast %20 : vector<16x1xi1> to vector<16x32xi1>
    %22 = vector.shape_cast %18 : vector<1x32xf32> to vector<1x32xf32>
    %23 = vector.broadcast %22 : vector<1x32xf32> to vector<16x32xf32>
    %24 = vector.shape_cast %19 : vector<1x32xf32> to vector<1x32xf32>
    %25 = vector.broadcast %24 : vector<1x32xf32> to vector<16x32xf32>
    %26 = arith.select %21, %23, %25 : vector<16x32xi1>, vector<16x32xf32>
    %27 = arith.addf %17, %26 : vector<16x32xf32>
    %28 = arith.mulf %27, %27 : vector<16x32xf32>
    %cst_4 = arith.constant dense<0.000000e+00> : vector<16xf32>
    %29 = vector.multi_reduction <add>, %28, %cst_4 [1] : vector<16x32xf32> to vector<16xf32>
    %30 = vector.shape_cast %29 : vector<16xf32> to vector<16x1xf32>
    %cst_5 = arith.constant 1.000000e-24 : f32
    %31 = vector.broadcast %cst_5 : f32 to vector<16x1xf32>
    %32 = arith.maximumf %30, %31 : vector<16x1xf32>
    %33 = math.rsqrt %32 : vector<16x1xf32>
    %34 = vector.broadcast %33 : vector<16x1xf32> to vector<16x32xf32>
    %35 = arith.mulf %27, %34 : vector<16x32xf32>
    %cst_6 = arith.constant dense<0.000000e+00> : vector<16x16xf32>
    %36 = tpu.matmul %35, %35, %cst_6 {dimension_numbers = #tpu.dot_dimension_numbers<[1], [1], [0], [0], [0, 0, 1, 0], [], []>} : vector<16x32xf32>, vector<16x32xf32>, vector<16x16xf32> -> vector<16x16xf32>
    %37 = vector.extract_strided_slice %36 {offsets = [0, 8], sizes = [8, 8], strides = [1, 1]} : vector<16x16xf32> to vector<8x8xf32>
    %c0_7 = arith.constant 0 : index
    %c0_8 = arith.constant 0 : index
    %38 = vector.load %arg5[%c0_7, %c0_8] : memref<8x8xf32, #tpu.memory_space<vmem>>, vector<8x8xf32>
    tpu.vector_store %arg5[%c0_7, %c0_8], %37 {strides = array<i32>} : memref<8x8xf32, #tpu.memory_space<vmem>>, vector<8x8xf32>,
    %39 = vector.extract_strided_slice %36 {offsets = [0, 0], sizes = [8, 8], strides = [1, 1]} : vector<16x16xf32> to vector<8x8xf32>
    %40 = vector.broadcast %0 : f32 to vector<8x8xf32>
    %41 = arith.mulf %40, %39 : vector<8x8xf32>
    %42 = vector.extract_strided_slice %36 {offsets = [8, 8], sizes = [8, 8], strides = [1, 1]} : vector<16x16xf32> to vector<8x8xf32>
    %43 = vector.broadcast %1 : f32 to vector<8x8xf32>
    %44 = arith.mulf %43, %42 : vector<8x8xf32>
    %45 = tpu.concatenate %41, %44 in 0 : vector<8x8xf32>, vector<8x8xf32> -> vector<16x8xf32>
    %cst_9 = arith.constant dense<0xFF800000> : vector<16xf32>
    %46 = vector.multi_reduction <maximumf>, %45, %cst_9 [1] : vector<16x8xf32> to vector<16xf32>
    %47 = vector.shape_cast %46 : vector<16xf32> to vector<16x1xf32>
    %48 = vector.broadcast %47 : vector<16x1xf32> to vector<16x8xf32>
    %49 = arith.subf %45, %48 : vector<16x8xf32>
    %50 = math.exp %49 : vector<16x8xf32>
    %cst_10 = arith.constant dense<0.000000e+00> : vector<16xf32>
    %51 = vector.multi_reduction <add>, %50, %cst_10 [1] : vector<16x8xf32> to vector<16xf32>
    %52 = vector.shape_cast %51 : vector<16xf32> to vector<16x1xf32>
    %53 = tpu.reciprocal %52 {approx = true} : vector<16x1xf32> -> vector<16x1xf32>
    %54 = arith.mulf %52, %53 : vector<16x1xf32>
    %cst_11 = arith.constant 2.000000e+00 : f32
    %55 = vector.broadcast %cst_11 : f32 to vector<16x1xf32>
    %56 = arith.subf %55, %54 : vector<16x1xf32>
    %57 = arith.mulf %53, %56 : vector<16x1xf32>
    %58 = vector.broadcast %57 : vector<16x1xf32> to vector<16x8xf32>
    %59 = arith.mulf %50, %58 : vector<16x8xf32>
    %60 = vector.extract_strided_slice %59 {offsets = [0, 0], sizes = [8, 8], strides = [1, 1]} : vector<16x8xf32> to vector<8x8xf32>
    %61 = vector.extract_strided_slice %59 {offsets = [8, 0], sizes = [8, 8], strides = [1, 1]} : vector<16x8xf32> to vector<8x8xf32>
    %62 = tpu.transpose %60, [1, 0] : vector<8x8xf32> -> vector<8x8xf32>
    %63 = arith.addf %60, %62 : vector<8x8xf32>
    %cst_12 = arith.constant 5.000000e-01 : f32
    %64 = vector.broadcast %cst_12 : f32 to vector<8x8xf32>
    %65 = arith.mulf %63, %64 : vector<8x8xf32>
    %66 = tpu.transpose %61, [1, 0] : vector<8x8xf32> -> vector<8x8xf32>
    %67 = arith.addf %61, %66 : vector<8x8xf32>
    %cst_13 = arith.constant 5.000000e-01 : f32
    %68 = vector.broadcast %cst_13 : f32 to vector<8x8xf32>
    %69 = arith.mulf %67, %68 : vector<8x8xf32>
    %70 = tpu.concatenate %65, %69 in 0 : vector<8x8xf32>, vector<8x8xf32> -> vector<16x8xf32>
    %71 = tpu.iota {dimensions = array<i32: 0>} : vector<16x8xi32>
    %72 = tpu.iota {dimensions = array<i32: 1>} : vector<16x8xi32>
    %c7_i32_14 = arith.constant 7 : i32
    %73 = vector.broadcast %c7_i32_14 : i32 to vector<16x8xi32>
    %74 = arith.andi %71, %73 : vector<16x8xi32>
    %75 = arith.cmpi eq, %74, %72 : vector<16x8xi32>
    %76 = arith.extui %75 : vector<16x8xi1> to vector<16x8xi32>
    %77 = arith.sitofp %76 : vector<16x8xi32> to vector<16x8xf32>
    %cst_15 = arith.constant 5.000000e-01 : f32
    %78 = vector.broadcast %cst_15 : f32 to vector<16x8xf32>
    %79 = arith.mulf %78, %70 : vector<16x8xf32>
    %80 = arith.subf %77, %79 : vector<16x8xf32>
    %81 = tpu.concatenate %80, %77 in 1 : vector<16x8xf32>, vector<16x8xf32> -> vector<16x16xf32>
    %82 = vector.extract_strided_slice %81 {offsets = [0, 0], sizes = [1, 16], strides = [1, 1]} : vector<16x16xf32> to vector<1x16xf32>
    %83 = vector.extract_strided_slice %81 {offsets = [8, 0], sizes = [1, 16], strides = [1, 1]} : vector<16x16xf32> to vector<1x16xf32>
    %84 = vector.shape_cast %6 : vector<16x1xi1> to vector<16x1xi1>
    %85 = vector.broadcast %84 : vector<16x1xi1> to vector<16x16xi1>
    %86 = vector.shape_cast %82 : vector<1x16xf32> to vector<1x16xf32>
    %87 = vector.broadcast %86 : vector<1x16xf32> to vector<16x16xf32>
    %88 = vector.shape_cast %83 : vector<1x16xf32> to vector<1x16xf32>
    %89 = vector.broadcast %88 : vector<1x16xf32> to vector<16x16xf32>
    %90 = arith.select %85, %87, %89 : vector<16x16xi1>, vector<16x16xf32>
    %91 = vector.extract_strided_slice %90 {offsets = [0, 0], sizes = [16, 1], strides = [1, 1]} : vector<16x16xf32> to vector<16x1xf32>
    %92 = tpu.reciprocal %91 {approx = true} : vector<16x1xf32> -> vector<16x1xf32>
    %93 = arith.mulf %91, %92 : vector<16x1xf32>
    %cst_16 = arith.constant 2.000000e+00 : f32
    %94 = vector.broadcast %cst_16 : f32 to vector<16x1xf32>
    %95 = arith.subf %94, %93 : vector<16x1xf32>
    %96 = arith.mulf %92, %95 : vector<16x1xf32>
    %97 = vector.broadcast %96 : vector<16x1xf32> to vector<16x16xf32>
    %98 = arith.mulf %90, %97 : vector<16x16xf32>
    %99 = vector.extract_strided_slice %81 {offsets = [0, 0], sizes = [16, 1], strides = [1, 1]} : vector<16x16xf32> to vector<16x1xf32>
    %c0_i32 = arith.constant 0 : i32
    %100 = vector.broadcast %c0_i32 : i32 to vector<16x1xi32>
    %101 = arith.cmpi eq, %8, %100 : vector<16x1xi32>
    %102 = vector.broadcast %99 : vector<16x1xf32> to vector<16x16xf32>
    %103 = arith.mulf %102, %98 : vector<16x16xf32>
    %104 = arith.subf %81, %103 : vector<16x16xf32>
    %105 = vector.shape_cast %101 : vector<16x1xi1> to vector<16x1xi1>
    %106 = vector.broadcast %105 : vector<16x1xi1> to vector<16x16xi1>
    %107 = arith.select %106, %98, %104 : vector<16x16xi1>, vector<16x16xf32>
    %108 = vector.extract_strided_slice %107 {offsets = [1, 0], sizes = [1, 16], strides = [1, 1]} : vector<16x16xf32> to vector<1x16xf32>
    %109 = vector.extract_strided_slice %107 {offsets = [9, 0], sizes = [1, 16], strides = [1, 1]} : vector<16x16xf32> to vector<1x16xf32>
    %110 = vector.shape_cast %6 : vector<16x1xi1> to vector<16x1xi1>
    %111 = vector.broadcast %110 : vector<16x1xi1> to vector<16x16xi1>
    %112 = vector.shape_cast %108 : vector<1x16xf32> to vector<1x16xf32>
    %113 = vector.broadcast %112 : vector<1x16xf32> to vector<16x16xf32>
    %114 = vector.shape_cast %109 : vector<1x16xf32> to vector<1x16xf32>
    %115 = vector.broadcast %114 : vector<1x16xf32> to vector<16x16xf32>
    %116 = arith.select %111, %113, %115 : vector<16x16xi1>, vector<16x16xf32>
    %117 = vector.extract_strided_slice %116 {offsets = [0, 1], sizes = [16, 1], strides = [1, 1]} : vector<16x16xf32> to vector<16x1xf32>
    %118 = tpu.reciprocal %117 {approx = true} : vector<16x1xf32> -> vector<16x1xf32>
    %119 = arith.mulf %117, %118 : vector<16x1xf32>
    %cst_17 = arith.constant 2.000000e+00 : f32
    %120 = vector.broadcast %cst_17 : f32 to vector<16x1xf32>
    %121 = arith.subf %120, %119 : vector<16x1xf32>
    %122 = arith.mulf %118, %121 : vector<16x1xf32>
    %123 = vector.broadcast %122 : vector<16x1xf32> to vector<16x16xf32>
    %124 = arith.mulf %116, %123 : vector<16x16xf32>
    %125 = vector.extract_strided_slice %107 {offsets = [0, 1], sizes = [16, 1], strides = [1, 1]} : vector<16x16xf32> to vector<16x1xf32>
    %c1_i32 = arith.constant 1 : i32
    %126 = vector.broadcast %c1_i32 : i32 to vector<16x1xi32>
    %127 = arith.cmpi eq, %8, %126 : vector<16x1xi32>
    %128 = vector.broadcast %125 : vector<16x1xf32> to vector<16x16xf32>
    %129 = arith.mulf %128, %124 : vector<16x16xf32>
    %130 = arith.subf %107, %129 : vector<16x16xf32>
    %131 = vector.shape_cast %127 : vector<16x1xi1> to vector<16x1xi1>
    %132 = vector.broadcast %131 : vector<16x1xi1> to vector<16x16xi1>
    %133 = arith.select %132, %124, %130 : vector<16x16xi1>, vector<16x16xf32>
    %134 = vector.extract_strided_slice %133 {offsets = [2, 0], sizes = [1, 16], strides = [1, 1]} : vector<16x16xf32> to vector<1x16xf32>
    %135 = vector.extract_strided_slice %133 {offsets = [10, 0], sizes = [1, 16], strides = [1, 1]} : vector<16x16xf32> to vector<1x16xf32>
    %136 = vector.shape_cast %6 : vector<16x1xi1> to vector<16x1xi1>
    %137 = vector.broadcast %136 : vector<16x1xi1> to vector<16x16xi1>
    %138 = vector.shape_cast %134 : vector<1x16xf32> to vector<1x16xf32>
    %139 = vector.broadcast %138 : vector<1x16xf32> to vector<16x16xf32>
    %140 = vector.shape_cast %135 : vector<1x16xf32> to vector<1x16xf32>
    %141 = vector.broadcast %140 : vector<1x16xf32> to vector<16x16xf32>
    %142 = arith.select %137, %139, %141 : vector<16x16xi1>, vector<16x16xf32>
    %143 = vector.extract_strided_slice %142 {offsets = [0, 2], sizes = [16, 1], strides = [1, 1]} : vector<16x16xf32> to vector<16x1xf32>
    %144 = tpu.reciprocal %143 {approx = true} : vector<16x1xf32> -> vector<16x1xf32>
    %145 = arith.mulf %143, %144 : vector<16x1xf32>
    %cst_18 = arith.constant 2.000000e+00 : f32
    %146 = vector.broadcast %cst_18 : f32 to vector<16x1xf32>
    %147 = arith.subf %146, %145 : vector<16x1xf32>
    %148 = arith.mulf %144, %147 : vector<16x1xf32>
    %149 = vector.broadcast %148 : vector<16x1xf32> to vector<16x16xf32>
    %150 = arith.mulf %142, %149 : vector<16x16xf32>
    %151 = vector.extract_strided_slice %133 {offsets = [0, 2], sizes = [16, 1], strides = [1, 1]} : vector<16x16xf32> to vector<16x1xf32>
    %c2_i32 = arith.constant 2 : i32
    %152 = vector.broadcast %c2_i32 : i32 to vector<16x1xi32>
    %153 = arith.cmpi eq, %8, %152 : vector<16x1xi32>
    %154 = vector.broadcast %151 : vector<16x1xf32> to vector<16x16xf32>
    %155 = arith.mulf %154, %150 : vector<16x16xf32>
    %156 = arith.subf %133, %155 : vector<16x16xf32>
    %157 = vector.shape_cast %153 : vector<16x1xi1> to vector<16x1xi1>
    %158 = vector.broadcast %157 : vector<16x1xi1> to vector<16x16xi1>
    %159 = arith.select %158, %150, %156 : vector<16x16xi1>, vector<16x16xf32>
    %160 = vector.extract_strided_slice %159 {offsets = [3, 0], sizes = [1, 16], strides = [1, 1]} : vector<16x16xf32> to vector<1x16xf32>
    %161 = vector.extract_strided_slice %159 {offsets = [11, 0], sizes = [1, 16], strides = [1, 1]} : vector<16x16xf32> to vector<1x16xf32>
    %162 = vector.shape_cast %6 : vector<16x1xi1> to vector<16x1xi1>
    %163 = vector.broadcast %162 : vector<16x1xi1> to vector<16x16xi1>
    %164 = vector.shape_cast %160 : vector<1x16xf32> to vector<1x16xf32>
    %165 = vector.broadcast %164 : vector<1x16xf32> to vector<16x16xf32>
    %166 = vector.shape_cast %161 : vector<1x16xf32> to vector<1x16xf32>
    %167 = vector.broadcast %166 : vector<1x16xf32> to vector<16x16xf32>
    %168 = arith.select %163, %165, %167 : vector<16x16xi1>, vector<16x16xf32>
    %169 = vector.extract_strided_slice %168 {offsets = [0, 3], sizes = [16, 1], strides = [1, 1]} : vector<16x16xf32> to vector<16x1xf32>
    %170 = tpu.reciprocal %169 {approx = true} : vector<16x1xf32> -> vector<16x1xf32>
    %171 = arith.mulf %169, %170 : vector<16x1xf32>
    %cst_19 = arith.constant 2.000000e+00 : f32
    %172 = vector.broadcast %cst_19 : f32 to vector<16x1xf32>
    %173 = arith.subf %172, %171 : vector<16x1xf32>
    %174 = arith.mulf %170, %173 : vector<16x1xf32>
    %175 = vector.broadcast %174 : vector<16x1xf32> to vector<16x16xf32>
    %176 = arith.mulf %168, %175 : vector<16x16xf32>
    %177 = vector.extract_strided_slice %159 {offsets = [0, 3], sizes = [16, 1], strides = [1, 1]} : vector<16x16xf32> to vector<16x1xf32>
    %c3_i32 = arith.constant 3 : i32
    %178 = vector.broadcast %c3_i32 : i32 to vector<16x1xi32>
    %179 = arith.cmpi eq, %8, %178 : vector<16x1xi32>
    %180 = vector.broadcast %177 : vector<16x1xf32> to vector<16x16xf32>
    %181 = arith.mulf %180, %176 : vector<16x16xf32>
    %182 = arith.subf %159, %181 : vector<16x16xf32>
    %183 = vector.shape_cast %179 : vector<16x1xi1> to vector<16x1xi1>
    %184 = vector.broadcast %183 : vector<16x1xi1> to vector<16x16xi1>
    %185 = arith.select %184, %176, %182 : vector<16x16xi1>, vector<16x16xf32>
    %186 = vector.extract_strided_slice %185 {offsets = [4, 0], sizes = [1, 16], strides = [1, 1]} : vector<16x16xf32> to vector<1x16xf32>
    %187 = vector.extract_strided_slice %185 {offsets = [12, 0], sizes = [1, 16], strides = [1, 1]} : vector<16x16xf32> to vector<1x16xf32>
    %188 = vector.shape_cast %6 : vector<16x1xi1> to vector<16x1xi1>
    %189 = vector.broadcast %188 : vector<16x1xi1> to vector<16x16xi1>
    %190 = vector.shape_cast %186 : vector<1x16xf32> to vector<1x16xf32>
    %191 = vector.broadcast %190 : vector<1x16xf32> to vector<16x16xf32>
    %192 = vector.shape_cast %187 : vector<1x16xf32> to vector<1x16xf32>
    %193 = vector.broadcast %192 : vector<1x16xf32> to vector<16x16xf32>
    %194 = arith.select %189, %191, %193 : vector<16x16xi1>, vector<16x16xf32>
    %195 = vector.extract_strided_slice %194 {offsets = [0, 4], sizes = [16, 1], strides = [1, 1]} : vector<16x16xf32> to vector<16x1xf32>
    %196 = tpu.reciprocal %195 {approx = true} : vector<16x1xf32> -> vector<16x1xf32>
    %197 = arith.mulf %195, %196 : vector<16x1xf32>
    %cst_20 = arith.constant 2.000000e+00 : f32
    %198 = vector.broadcast %cst_20 : f32 to vector<16x1xf32>
    %199 = arith.subf %198, %197 : vector<16x1xf32>
    %200 = arith.mulf %196, %199 : vector<16x1xf32>
    %201 = vector.broadcast %200 : vector<16x1xf32> to vector<16x16xf32>
    %202 = arith.mulf %194, %201 : vector<16x16xf32>
    %203 = vector.extract_strided_slice %185 {offsets = [0, 4], sizes = [16, 1], strides = [1, 1]} : vector<16x16xf32> to vector<16x1xf32>
    %c4_i32 = arith.constant 4 : i32
    %204 = vector.broadcast %c4_i32 : i32 to vector<16x1xi32>
    %205 = arith.cmpi eq, %8, %204 : vector<16x1xi32>
    %206 = vector.broadcast %203 : vector<16x1xf32> to vector<16x16xf32>
    %207 = arith.mulf %206, %202 : vector<16x16xf32>
    %208 = arith.subf %185, %207 : vector<16x16xf32>
    %209 = vector.shape_cast %205 : vector<16x1xi1> to vector<16x1xi1>
    %210 = vector.broadcast %209 : vector<16x1xi1> to vector<16x16xi1>
    %211 = arith.select %210, %202, %208 : vector<16x16xi1>, vector<16x16xf32>
    %212 = vector.extract_strided_slice %211 {offsets = [5, 0], sizes = [1, 16], strides = [1, 1]} : vector<16x16xf32> to vector<1x16xf32>
    %213 = vector.extract_strided_slice %211 {offsets = [13, 0], sizes = [1, 16], strides = [1, 1]} : vector<16x16xf32> to vector<1x16xf32>
    %214 = vector.shape_cast %6 : vector<16x1xi1> to vector<16x1xi1>
    %215 = vector.broadcast %214 : vector<16x1xi1> to vector<16x16xi1>
    %216 = vector.shape_cast %212 : vector<1x16xf32> to vector<1x16xf32>
    %217 = vector.broadcast %216 : vector<1x16xf32> to vector<16x16xf32>
    %218 = vector.shape_cast %213 : vector<1x16xf32> to vector<1x16xf32>
    %219 = vector.broadcast %218 : vector<1x16xf32> to vector<16x16xf32>
    %220 = arith.select %215, %217, %219 : vector<16x16xi1>, vector<16x16xf32>
    %221 = vector.extract_strided_slice %220 {offsets = [0, 5], sizes = [16, 1], strides = [1, 1]} : vector<16x16xf32> to vector<16x1xf32>
    %222 = tpu.reciprocal %221 {approx = true} : vector<16x1xf32> -> vector<16x1xf32>
    %223 = arith.mulf %221, %222 : vector<16x1xf32>
    %cst_21 = arith.constant 2.000000e+00 : f32
    %224 = vector.broadcast %cst_21 : f32 to vector<16x1xf32>
    %225 = arith.subf %224, %223 : vector<16x1xf32>
    %226 = arith.mulf %222, %225 : vector<16x1xf32>
    %227 = vector.broadcast %226 : vector<16x1xf32> to vector<16x16xf32>
    %228 = arith.mulf %220, %227 : vector<16x16xf32>
    %229 = vector.extract_strided_slice %211 {offsets = [0, 5], sizes = [16, 1], strides = [1, 1]} : vector<16x16xf32> to vector<16x1xf32>
    %c5_i32 = arith.constant 5 : i32
    %230 = vector.broadcast %c5_i32 : i32 to vector<16x1xi32>
    %231 = arith.cmpi eq, %8, %230 : vector<16x1xi32>
    %232 = vector.broadcast %229 : vector<16x1xf32> to vector<16x16xf32>
    %233 = arith.mulf %232, %228 : vector<16x16xf32>
    %234 = arith.subf %211, %233 : vector<16x16xf32>
    %235 = vector.shape_cast %231 : vector<16x1xi1> to vector<16x1xi1>
    %236 = vector.broadcast %235 : vector<16x1xi1> to vector<16x16xi1>
    %237 = arith.select %236, %228, %234 : vector<16x16xi1>, vector<16x16xf32>
    %238 = vector.extract_strided_slice %237 {offsets = [6, 0], sizes = [1, 16], strides = [1, 1]} : vector<16x16xf32> to vector<1x16xf32>
    %239 = vector.extract_strided_slice %237 {offsets = [14, 0], sizes = [1, 16], strides = [1, 1]} : vector<16x16xf32> to vector<1x16xf32>
    %240 = vector.shape_cast %6 : vector<16x1xi1> to vector<16x1xi1>
    %241 = vector.broadcast %240 : vector<16x1xi1> to vector<16x16xi1>
    %242 = vector.shape_cast %238 : vector<1x16xf32> to vector<1x16xf32>
    %243 = vector.broadcast %242 : vector<1x16xf32> to vector<16x16xf32>
    %244 = vector.shape_cast %239 : vector<1x16xf32> to vector<1x16xf32>
    %245 = vector.broadcast %244 : vector<1x16xf32> to vector<16x16xf32>
    %246 = arith.select %241, %243, %245 : vector<16x16xi1>, vector<16x16xf32>
    %247 = vector.extract_strided_slice %246 {offsets = [0, 6], sizes = [16, 1], strides = [1, 1]} : vector<16x16xf32> to vector<16x1xf32>
    %248 = tpu.reciprocal %247 {approx = true} : vector<16x1xf32> -> vector<16x1xf32>
    %249 = arith.mulf %247, %248 : vector<16x1xf32>
    %cst_22 = arith.constant 2.000000e+00 : f32
    %250 = vector.broadcast %cst_22 : f32 to vector<16x1xf32>
    %251 = arith.subf %250, %249 : vector<16x1xf32>
    %252 = arith.mulf %248, %251 : vector<16x1xf32>
    %253 = vector.broadcast %252 : vector<16x1xf32> to vector<16x16xf32>
    %254 = arith.mulf %246, %253 : vector<16x16xf32>
    %255 = vector.extract_strided_slice %237 {offsets = [0, 6], sizes = [16, 1], strides = [1, 1]} : vector<16x16xf32> to vector<16x1xf32>
    %c6_i32 = arith.constant 6 : i32
    %256 = vector.broadcast %c6_i32 : i32 to vector<16x1xi32>
    %257 = arith.cmpi eq, %8, %256 : vector<16x1xi32>
    %258 = vector.broadcast %255 : vector<16x1xf32> to vector<16x16xf32>
    %259 = arith.mulf %258, %254 : vector<16x16xf32>
    %260 = arith.subf %237, %259 : vector<16x16xf32>
    %261 = vector.shape_cast %257 : vector<16x1xi1> to vector<16x1xi1>
    %262 = vector.broadcast %261 : vector<16x1xi1> to vector<16x16xi1>
    %263 = arith.select %262, %254, %260 : vector<16x16xi1>, vector<16x16xf32>
    %264 = vector.extract_strided_slice %263 {offsets = [7, 0], sizes = [1, 16], strides = [1, 1]} : vector<16x16xf32> to vector<1x16xf32>
    %265 = vector.extract_strided_slice %263 {offsets = [15, 0], sizes = [1, 16], strides = [1, 1]} : vector<16x16xf32> to vector<1x16xf32>
    %266 = vector.shape_cast %6 : vector<16x1xi1> to vector<16x1xi1>
    %267 = vector.broadcast %266 : vector<16x1xi1> to vector<16x16xi1>
    %268 = vector.shape_cast %264 : vector<1x16xf32> to vector<1x16xf32>
    %269 = vector.broadcast %268 : vector<1x16xf32> to vector<16x16xf32>
    %270 = vector.shape_cast %265 : vector<1x16xf32> to vector<1x16xf32>
    %271 = vector.broadcast %270 : vector<1x16xf32> to vector<16x16xf32>
    %272 = arith.select %267, %269, %271 : vector<16x16xi1>, vector<16x16xf32>
    %273 = vector.extract_strided_slice %272 {offsets = [0, 7], sizes = [16, 1], strides = [1, 1]} : vector<16x16xf32> to vector<16x1xf32>
    %274 = tpu.reciprocal %273 {approx = true} : vector<16x1xf32> -> vector<16x1xf32>
    %275 = arith.mulf %273, %274 : vector<16x1xf32>
    %cst_23 = arith.constant 2.000000e+00 : f32
    %276 = vector.broadcast %cst_23 : f32 to vector<16x1xf32>
    %277 = arith.subf %276, %275 : vector<16x1xf32>
    %278 = arith.mulf %274, %277 : vector<16x1xf32>
    %279 = vector.broadcast %278 : vector<16x1xf32> to vector<16x16xf32>
    %280 = arith.mulf %272, %279 : vector<16x16xf32>
    %281 = vector.extract_strided_slice %263 {offsets = [0, 7], sizes = [16, 1], strides = [1, 1]} : vector<16x16xf32> to vector<16x1xf32>
    %c7_i32_24 = arith.constant 7 : i32
    %282 = vector.broadcast %c7_i32_24 : i32 to vector<16x1xi32>
    %283 = arith.cmpi eq, %8, %282 : vector<16x1xi32>
    %284 = vector.broadcast %281 : vector<16x1xf32> to vector<16x16xf32>
    %285 = arith.mulf %284, %280 : vector<16x16xf32>
    %286 = arith.subf %263, %285 : vector<16x16xf32>
    %287 = vector.shape_cast %283 : vector<16x1xi1> to vector<16x1xi1>
    %288 = vector.broadcast %287 : vector<16x1xi1> to vector<16x16xi1>
    %289 = arith.select %288, %280, %286 : vector<16x16xi1>, vector<16x16xf32>
    %290 = vector.extract_strided_slice %289 {offsets = [0, 8], sizes = [16, 8], strides = [1, 1]} : vector<16x16xf32> to vector<16x8xf32>
    %cst_25 = arith.constant 5.000000e-01 : f32
    %291 = vector.broadcast %cst_25 : f32 to vector<16x8xf32>
    %292 = arith.mulf %291, %290 : vector<16x8xf32>
    %293 = vector.extract_strided_slice %292 {offsets = [0, 0], sizes = [8, 8], strides = [1, 1]} : vector<16x8xf32> to vector<8x8xf32>
    %294 = vector.extract_strided_slice %292 {offsets = [8, 0], sizes = [8, 8], strides = [1, 1]} : vector<16x8xf32> to vector<8x8xf32>
    %295 = tpu.transpose %293, [1, 0] : vector<8x8xf32> -> vector<8x8xf32>
    %296 = arith.addf %293, %295 : vector<8x8xf32>
    %cst_26 = arith.constant 5.000000e-01 : f32
    %297 = vector.broadcast %cst_26 : f32 to vector<8x8xf32>
    %298 = arith.mulf %296, %297 : vector<8x8xf32>
    %299 = tpu.transpose %294, [1, 0] : vector<8x8xf32> -> vector<8x8xf32>
    %300 = arith.addf %294, %299 : vector<8x8xf32>
    %cst_27 = arith.constant 5.000000e-01 : f32
    %301 = vector.broadcast %cst_27 : f32 to vector<8x8xf32>
    %302 = arith.mulf %300, %301 : vector<8x8xf32>
    %303 = tpu.concatenate %298, %302 in 0 : vector<8x8xf32>, vector<8x8xf32> -> vector<16x8xf32>
    %cst_28 = arith.constant dense<0.000000e+00> : vector<16xf32>
    %304 = vector.multi_reduction <add>, %303, %cst_28 [1] : vector<16x8xf32> to vector<16xf32>
    %305 = vector.shape_cast %304 : vector<16xf32> to vector<16x1xf32>
    %306 = tpu.reciprocal %305 {approx = true} : vector<16x1xf32> -> vector<16x1xf32>
    %307 = arith.mulf %305, %306 : vector<16x1xf32>
    %cst_29 = arith.constant 2.000000e+00 : f32
    %308 = vector.broadcast %cst_29 : f32 to vector<16x1xf32>
    %309 = arith.subf %308, %307 : vector<16x1xf32>
    %310 = arith.mulf %306, %309 : vector<16x1xf32>
    %311 = vector.broadcast %310 : vector<16x1xf32> to vector<16x8xf32>
    %312 = arith.mulf %303, %311 : vector<16x8xf32>
    %cst_30 = arith.constant 1.000000e-07 : f32
    %313 = vector.broadcast %cst_30 : f32 to vector<16x8xf32>
    %314 = arith.addf %312, %313 : vector<16x8xf32>
    %315 = math.log %314 : vector<16x8xf32>
    %316 = vector.extract_strided_slice %315 {offsets = [8, 0], sizes = [8, 8], strides = [1, 1]} : vector<16x8xf32> to vector<8x8xf32>
    %317 = vector.extract_strided_slice %315 {offsets = [0, 0], sizes = [8, 8], strides = [1, 1]} : vector<16x8xf32> to vector<8x8xf32>
    %318 = tpu.concatenate %316, %317 in 0 : vector<8x8xf32>, vector<8x8xf32> -> vector<16x8xf32>
    %cst_31 = arith.constant dense<0.000000e+00> : vector<16x16xf32>
    %319 = tpu.matmul %312, %318, %cst_31 {dimension_numbers = #tpu.dot_dimension_numbers<[1], [1], [0], [0], [0, 0, 1, 0], [], []>} : vector<16x8xf32>, vector<16x8xf32>, vector<16x16xf32> -> vector<16x16xf32>
    %320 = vector.extract_strided_slice %319 {offsets = [0, 0], sizes = [8, 8], strides = [1, 1]} : vector<16x16xf32> to vector<8x8xf32>
    %321 = vector.extract_strided_slice %319 {offsets = [8, 8], sizes = [8, 8], strides = [1, 1]} : vector<16x16xf32> to vector<8x8xf32>
    %322 = arith.addf %320, %321 : vector<8x8xf32>
    %cst_32 = arith.constant 5.000000e-01 : f32
    %323 = vector.broadcast %cst_32 : f32 to vector<8x8xf32>
    %324 = arith.mulf %323, %322 : vector<8x8xf32>
    %325 = arith.addf %324, %37 : vector<8x8xf32>
    %c0_33 = arith.constant 0 : index
    %c0_34 = arith.constant 0 : index
    %326 = vector.load %arg2[%c0_33, %c0_34] : memref<8x8xf32, #tpu.memory_space<vmem>>, vector<8x8xf32>
    %cst_35 = arith.constant 0.000000e+00 : f32
    %327 = arith.subf %cst_35, %2 : f32
    %328 = vector.broadcast %327 : f32 to vector<8x8xf32>
    %329 = arith.mulf %328, %325 : vector<8x8xf32>
    %330 = vector.broadcast %3 : f32 to vector<8x8xf32>
    %331 = arith.mulf %330, %325 : vector<8x8xf32>
    %332 = tpu.concatenate %329, %331 in 0 : vector<8x8xf32>, vector<8x8xf32> -> vector<16x8xf32>
    %cst_36 = arith.constant 1.000000e+00 : f32
    %333 = vector.broadcast %cst_36 : f32 to vector<8x8xf32>
    %334 = arith.subf %333, %326 : vector<8x8xf32>
    %335 = tpu.concatenate %326, %334 in 0 : vector<8x8xf32>, vector<8x8xf32> -> vector<16x8xf32>
    %336 = math.exp %332 : vector<16x8xf32>
    %337 = arith.mulf %335, %336 : vector<16x8xf32>
    %338 = vector.extract_strided_slice %337 {offsets = [0, 0], sizes = [8, 8], strides = [1, 1]} : vector<16x8xf32> to vector<8x8xf32>
    %339 = vector.shape_cast %338 : vector<8x8xf32> to vector<1x8x8xf32>
    %cst_37 = arith.constant dense<0.000000e+00> : vector<1xf32>
    %340 = vector.multi_reduction <add>, %339, %cst_37 [1, 2] : vector<1x8x8xf32> to vector<1xf32>
    %341 = vector.shape_cast %340 : vector<1xf32> to vector<1x1x1xf32>
    %342 = vector.extract %341[0, 0, 0] : f32 from vector<1x1x1xf32>
    %343 = vector.extract_strided_slice %337 {offsets = [8, 0], sizes = [8, 8], strides = [1, 1]} : vector<16x8xf32> to vector<8x8xf32>
    %344 = vector.shape_cast %343 : vector<8x8xf32> to vector<1x8x8xf32>
    %cst_38 = arith.constant dense<0.000000e+00> : vector<1xf32>
    %345 = vector.multi_reduction <add>, %344, %cst_38 [1, 2] : vector<1x8x8xf32> to vector<1xf32>
    %346 = vector.shape_cast %345 : vector<1xf32> to vector<1x1x1xf32>
    %347 = vector.extract %346[0, 0, 0] : f32 from vector<1x1x1xf32>
    %cst_39 = arith.constant 1.000000e+00 : f32
    %348 = arith.addf %cst_39, %342 : f32
    %349 = math.log %348 : f32
    %350 = arith.divf %349, %2 : f32
    %cst_40 = arith.constant 1.000000e+00 : f32
    %351 = arith.addf %cst_40, %347 : f32
    %352 = math.log %351 : f32
    %353 = arith.divf %352, %3 : f32
    %354 = arith.addf %350, %353 : f32
    %355 = vector.broadcast %354 : f32 to vector<1x1xf32>
    %c0_41 = arith.constant 0 : index
    %c0_42 = arith.constant 0 : index
    %356 = vector.load %arg4[%c0_41, %c0_42] : memref<1x1xf32, #tpu.memory_space<vmem>>, vector<1x1xf32>
    tpu.vector_store %arg4[%c0_41, %c0_42], %355 {strides = array<i32>} : memref<1x1xf32, #tpu.memory_space<vmem>>, vector<1x1xf32>,
    return
  }
}

</mosaic_0001>

<bundles_post_ra>
// kernel: tpu_custom_call.1
= control target key start
LH: loop header
LB: loop body
LE: loop exit
PB: predicated region body
PF: predicated region fallthrough
CT: control target
= control target key end

     0   :  { %11 = vsyncpa [#allocation4], 0  ;;  %s1361_s0 = inlined_call_operand.vmem [shape: f32[16,32], index: 0, kind: input, shape index: {}]   ;;  %s1362_s1 = inlined_call_operand.vmem [shape: f32[66,32], index: 1, kind: input, shape index: {}]   ;;  %s1363_s2 = inlined_call_operand.vmem [shape: f32[8,8], index: 2, kind: input, shape index: {}]   ;;  %s1364_s3 = inlined_call_operand.vmem [shape: f32[4], index: 3, kind: input, shape index: {}]   ;;  %s1365_s4 = inlined_call_operand.hbm [shape: f32[1,1], index: 4, kind: output, shape index: {0}]   ;;  %s1366_s5 = inlined_call_operand.hbm [shape: f32[8,8], index: 5, kind: output, shape index: {1}]  }
   0x1   :  { %12 = vsyncpa [#allocation3], 0 }
   0x2   :  { %13 = vsyncpa [#allocation7], 0  ;;  %s25_s20 = sshll.u32 %s1364_s3, 4  ;;  %s1180_s21 = smov [#allocation2]   ;;  %s26_s20 = int_to_ptr.vmem [resolvable:$true] %s25_s20 }
   0x3   :  { %28 = dma.vmem_to_smem %s26_s20, 16, %s1180_s21, [#allocation4]  }
   0x4   :  { %1174 = dma.done.wait [#allocation4], 16  }
   0x5   :  { %1175 = vsyncadd [#allocation4], 4294967280 }
   0x6   :  { %33 = sfence }
   0x7   :  { %v54_v0 = vld [vmem:[%s1362_s1 + $0x38] sm:$0xff]  ;;  %vm56_vm0 = vcmask 261120   ;;  %v53_v1 = vld [vmem:[%s1362_s1 + $0x30] sm:$0xff]  ;;  %v52_v2 = vld [vmem:[%s1362_s1 + $0x28] sm:$0xff]  ;;  %s1181_s18 = smov 96   ;;  %vm195_vm7 = vcmask 64512   ;;  %v38_v61 = vlaneseq }
   0x8   :  { %974 = vmatpush.xpose.msk.msra.mxu0 %vm56_vm0, %v54_v0  ;;  %994 = vmatpush.xpose.msk.msra.mxu3 %vm56_vm0, %v54_v0  ;;  %v51_v3 = vld [vmem:[%s1362_s1 + $0x20] sm:$0xff]  ;;  %v50_v4 = vld [vmem:[%s1362_s1 + $0x18] sm:$0xff]  ;;  %v49_v5 = vld [vmem:[%s1362_s1 + $0x10] sm:$0xff]  ;;  %s1182_s19 = smov 120   ;;  %s1184_s20 = smov 8  }
   0x9   :  { %v48_v6 = vld [vmem:[%s1362_s1 + $0x8] sm:$0xff]  ;;  %v47_v7 = vld [vmem:[%s1362_s1] sm:$0xff]  ;;  %v39_v0 = vshrl.u32 %v38_v61, 7  ;;  %s1337_s21 = sld [smem:[#allocation2 + $0x2]]  ;;  %s956_s28 = sshll.u32 %s1366_s5, 4  ;;  %s957_s28 = int_to_ptr.hbm [resolvable:$true] %s956_s28 }
   0xa   :  { %v45_v8 = vld [vmem:[%s1361_s0] sm:$0xff]  ;;  %v46_v9 = vld [vmem:[%s1361_s0 + $0x8] sm:$0xff]  ;;  %s34_s0 = sld [smem:[#allocation2]]  ;;  %s1194_s10 = smov [#allocation5]  }
   0xb   :  { %v55_v10 = vld [vmem:[%s1362_s1 + $0x40] sm:$0x3]  ;;  %s971_s1 = sld [smem:[#allocation2 + $0x1]]  ;;  %s943_s11 = sshll.u32 %s1194_s10, 4  ;;  %s944_s11 = int_to_ptr.vmem [resolvable:$true] %s943_s11 }
   0xc   :  { %975 = vmatpush.xpose.msk.msra.mxu0 %vm56_vm0, %v53_v1  ;;  %995 = vmatpush.xpose.msk.msra.mxu3 %vm56_vm0, %v53_v1  ;;  %v124_v11 = vperm.slane %v55_v10, 0  ;;  %v125_v17 = vperm.slane %v55_v10, 1  ;;  %s973_s22 = sld [smem:[#allocation2 + $0x3]]  ;;  %s945_s17 = sshll.u32 %s1365_s4, 4  ;;  %s946_s17 = int_to_ptr.hbm [resolvable:$true] %s945_s17 }
   0xf   :  { %s858_s23 = ssub.f32 0.0, %s1337_s21 }
  0x10   :  { %976 = vmatpush.xpose.msk.msra.mxu0 %vm56_vm0, %v52_v2  ;;  %996 = vmatpush.xpose.msk.msra.mxu3 %vm56_vm0, %v52_v2  ;;  %v197_v42 = vstv %s34_s0 }
  0x11   :  { %v199_v46 = vstv %s971_s1 }
  0x14   :  { %977 = vmatpush.xpose.msk.msra.mxu0 %vm56_vm0, %v51_v3  ;;  %997 = vmatpush.xpose.msk.msra.mxu3 %vm56_vm0, %v51_v3  ;;  %v40_v3 = vadd.s32 8, %v39_v0 }
  0x18   :  { %978 = vmatpush.xpose.msk.msra.mxu0 %vm56_vm0, %v50_v4  ;;  %998 = vmatpush.xpose.msk.msra.mxu3 %vm56_vm0, %v50_v4 }
  0x1c   :  { %979 = vmatpush.xpose.msk.msra.mxu0 %vm56_vm0, %v49_v5  ;;  %999 = vmatpush.xpose.msk.msra.mxu3 %vm56_vm0, %v49_v5 }
  0x20   :  { %980 = vmatpush.xpose.msk.msra.mxu0 %vm56_vm0, %v48_v6  ;;  %1000 = vmatpush.xpose.msk.msra.mxu3 %vm56_vm0, %v48_v6  ;;  %v1293_v6 = vand.u32 7, %v39_v0 }
  0x22   :  { %vm347_vm10 = vcmp.eq.s32.totalorder %v1293_v6, 0  ;;  %vm393_vm12 = vcmp.eq.s32.totalorder %v1293_v6, 1  ;;  %vm439_vm14 = vcmp.eq.s32.totalorder %v1293_v6, 2 }
  0x24   :  { %981 = vmatpush.xpose.msk.msra.mxu0 %vm56_vm0, %v47_v7  ;;  %1001 = vmatpush.xpose.msk.msra.mxu3 %vm56_vm0, %v47_v7  ;;  %v1295_v7 = vand.u32 7, %v40_v3 }
  0x26   :  { %vm348_vm11 = vcmp.eq.s32.totalorder %v1295_v7, 0  ;;  %vm394_vm13 = vcmp.eq.s32.totalorder %v1295_v7, 1  ;;  %vm440_vm15 = vcmp.eq.s32.totalorder %v1295_v7, 2 }
  0x27   :  { %982 = vmatmul.msk.f32.vlgmr.msra.gmra.mxu0 %vm56_vm0, %v45_v8  ;;  %983 = vmatmul.msk.f32.vlgmr.msra.gmra.mxu3 %vm56_vm0, %v46_v9  ;;  %v302_v8 = vand.u32 127, %v38_v61  ;;  %v1183_v9 = vmov 0.0  }
  0x29   :  { %vm303_vm8 = vcmp.eq.s32.totalorder %v1293_v6, %v302_v8  ;;  %vm304_vm9 = vcmp.eq.s32.totalorder %v1295_v7, %v302_v8 }
  0x2a   :  { %v988_v10 = vsel %vm303_vm8, 1.0, %v1183_v9  ;;  %vm624_vm8 = vcmp.eq.s32.totalorder %v1295_v7, 6 }
  0xa4   :  { %v104_v12 = vpop.f32.mrf.mxu0 }
  0xa5   :  { %v128_v13 = vadd.f32 %v124_v11, %v104_v12  ;;  %v989_v11 = vsel %vm304_vm9, 1.0, %v1183_v9  ;;  %v1187_v9 = vmov 2   ;;  %vm669_vm9 = vcmp.eq.s32.totalorder %v1293_v6, 7 }
  0xa6   :  { %v1029_v12 = vpack.i.bf16 %v989_v11, %v988_v10 }
  0xa7   :  { %v130_v14 = vmul.f32 %v128_v13, %v128_v13 }
  0xa9   :  { %v132_v15 = vsel %vm56_vm0, %v130_v14, 0.0 }
  0xaa   :  { %v107_v16 = vpop.f32.mrf.mxu3  ;;  %133 = vadd.xlane.f32.xlu1 %v132_v15 }
  0xab   :  { %118 = vrot.lane.b32.xlu0 %v107_v16, %s1181_s18 }
 0x11d   :  { %v119_v18 = vpop.permute.xlu0 %118  ;;  %v134_v22 = vpop.xlane.xlu1 %133 }
 0x11e   :  { %v129_v19 = vadd.f32 %v125_v17, %v119_v18  ;;  %v138_v23 = vmax.f32 %v134_v22, 1e-24 }
 0x120   :  { %v131_v20 = vmul.f32 %v129_v19, %v129_v19  ;;  %1050 = vrsqrt.f32 %v138_v23  ;;  %vm146_vm1 = vweird.f32 %v138_v23 }
 0x122   :  { %v135_v21 = vsel %vm56_vm0, %v131_v20, 0.0 }
 0x123   :  { %136 = vadd.xlane.f32.xlu0 %v135_v21 }
 0x126   :  { %v1051_v24 = vpop.eup %1050 }
 0x127   :  { %v141_v27 = vmul.f32 %v1051_v24, %v138_v23  ;;  %vm147_vm2 = vweird.f32 %v1051_v24 }
 0x128   :  { %vm148_vm4 = vmor %vm146_vm1, %vm147_vm2  ;;  %vm486_vm1 = vcmp.eq.s32.totalorder %v1295_v7, 3  ;;  %vm531_vm2 = vcmp.eq.s32.totalorder %v1293_v6, 4 }
 0x129   :  { %v142_v28 = vmul.f32 %v1051_v24, %v141_v27 }
 0x12b   :  { %v143_v30 = vmul.f32 0.5, %v142_v28 }
 0x12d   :  { %v144_v33 = vsub.f32 1.5, %v143_v30 }
 0x12f   :  { %v145_v37 = vmul.f32 %v1051_v24, %v144_v33  ;;  %v1186_v33 = vmov 1  }
 0x131   :  { %v149_v40 = vsel %vm148_vm4, %v1051_v24, %v145_v37  ;;  %vm577_vm4 = vcmp.eq.s32.totalorder %v1293_v6, 5 }
 0x132   :  { %v160_v41 = vmul.f32 %v149_v40, %v128_v13 }
 0x196   :  { %v137_v25 = vpop.xlane.xlu0 %136 }
 0x197   :  { %v139_v26 = vmax.f32 %v137_v25, 1e-24 }
 0x199   :  { %1052 = vrsqrt.f32 %v139_v26  ;;  %vm156_vm5 = vweird.f32 %v139_v26 }
 0x19f   :  { %v1053_v29 = vpop.eup %1052 }
 0x1a0   :  { %v151_v31 = vmul.f32 %v1053_v29, %v139_v26  ;;  %vm157_vm3 = vweird.f32 %v1053_v29 }
 0x1a1   :  { %vm158_vm6 = vmor %vm156_vm5, %vm157_vm3  ;;  %vm532_vm3 = vcmp.eq.s32.totalorder %v1295_v7, 4  ;;  %vm578_vm5 = vcmp.eq.s32.totalorder %v1295_v7, 5 }
 0x1a2   :  { %v152_v32 = vmul.f32 %v1053_v29, %v151_v31 }
 0x1a4   :  { %v153_v34 = vmul.f32 0.5, %v152_v32 }
 0x1a6   :  { %v154_v35 = vsub.f32 1.5, %v153_v34 }
 0x1a8   :  { %v155_v36 = vmul.f32 %v1053_v29, %v154_v35 }
 0x1aa   :  { %v159_v38 = vsel %vm158_vm6, %v1053_v29, %v155_v36  ;;  %vm623_vm6 = vcmp.eq.s32.totalorder %v1293_v6, 6 }
 0x1ab   :  { %v161_v39 = vmul.f32 %v159_v38, %v129_v19  ;;  %v1185_v19 = vmov 0  }
 0x1ac   :  { %1034 = vset.pattern.permute.xlu2 %v1185_v19 }
 0x1ad   :  { %984 = vmatpush.xpose.msk.msra.mxu1 %vm56_vm0, %v161_v39 }
 0x1b1   :  { %985 = vmatpush.xpose.msk.msra.mxu1 %vm56_vm0, %v160_v41 }
 0x1b4   :  { %986 = vmatmul.msk.f32.vlgmr.msra.gmra.mxu1 %vm56_vm0, %v160_v41 }
 0x1bc   :  { %987 = vmatmul.msk.f32.gmra.mxu1 %vm56_vm0, %v161_v39  ;;  %vm485_vm0 = vcmp.eq.s32.totalorder %v1293_v6, 3 }
 0x231   :  { %v1285_v43 = vpop.f32.mrf.mxu1 }
 0x232   :  { %v198_v44 = vmul.f32 %v197_v42, %v1285_v43 }
 0x234   :  { %v205_v45 = vsel %vm195_vm7, %v198_v44, -inf }
 0x235   :  { %206 = vmax.xlane.f32.xlu2 %v205_v45 }
 0x239   :  { %v188_v47 = vpop.f32.mrf.mxu1 }
 0x23a   :  { %v200_v48 = vmul.f32 %v199_v46, %v188_v47 }
 0x23c   :  { %202 = vrot.lane.b32.xlu1 %v200_v48, %s1182_s19 }
 0x2a8   :  { %v207_v49 = vpop.xlane.xlu2 %206 }
 0x2a9   :  { %v211_v50 = vsub.f32 %v198_v44, %v207_v49 }
 0x2ab   :  { %v213_v51 = vmul.f32 1.442695, %v211_v50 }
 0x2ad   :  { %1054 = vpow2.f32 %v213_v51 }
 0x2ae   :  { %v203_v52 = vpop.permute.xlu1 %202 }
 0x2af   :  { %v208_v53 = vsel %vm195_vm7, %v203_v52, -inf }
 0x2b0   :  { %209 = vmax.xlane.f32.xlu2 %v208_v53 }
 0x2b3   :  { %v1055_v54 = vpop.eup %1054 }
 0x2b4   :  { %v217_v55 = vsel %vm195_vm7, %v1055_v54, 0.0 }
 0x2b8   :  { %218 = vadd.xlane.f32.xlu2 %v217_v55 }
 0x323   :  { %v210_v56 = vpop.xlane.xlu2 %209 }
 0x324   :  { %v212_v57 = vsub.f32 %v203_v52, %v210_v56 }
 0x326   :  { %v215_v58 = vmul.f32 1.442695, %v212_v57 }
 0x328   :  { %1056 = vpow2.f32 %v215_v58 }
 0x32b   :  { %v219_v59 = vpop.xlane.xlu2 %218 }
 0x32c   :  { %1058 = vrcp.f32 %v219_v59 }
 0x32e   :  { %v1057_v60 = vpop.eup %1056 }
 0x32f   :  { %v220_v62 = vsel %vm195_vm7, %v1057_v60, 0.0 }
 0x330   :  { %221 = vadd.xlane.f32.xlu2 %v220_v62 }
 0x332   :  { %v1059_v63 = vpop.eup %1058 }
 0x333   :  { %v225_v1 = vmul.f32 %v1059_v63, %v219_v59 }
 0x335   :  { %v227_v2 = vsub.f32 2.0, %v225_v1 }
 0x337   :  { %v229_v4 = vmul.f32 %v1059_v63, %v227_v2 }
 0x339   :  { %v231_v5 = vmul.f32 %v1055_v54, %v229_v4 }
 0x33b   :  { %233 = vxpose.xlu1.b32.start.end [1/1] (short) (narrow) %v231_v5, 8 }
 0x348   :  { %1030 = vrot.lane.b32.xlu2 %v1029_v12, %s1184_s20 }
 0x38e   :  { %1035 = vset.pattern.permute.xlu1 %v1186_v33 }
 0x3a3   :  { %v222_v13 = vpop.xlane.xlu2 %221 }
 0x3a4   :  { %1060 = vrcp.f32 %v222_v13 }
 0x3aa   :  { %v1061_v14 = vpop.eup %1060 }
 0x3ab   :  { %v226_v15 = vmul.f32 %v1061_v14, %v222_v13  ;;  %v1031_v22 = vpop.permute.xlu2 %1030 }
 0x3ac   :  { %v1032_v25 = vunpack.i.l.bf16 %v1031_v22  ;;  %v1033_v46 = vunpack.i.h.bf16 %v1031_v22 }
 0x3ad   :  { %v228_v16 = vsub.f32 2.0, %v226_v15 }
 0x3af   :  { %v230_v17 = vmul.f32 %v1061_v14, %v228_v16 }
 0x3b1   :  { %v232_v18 = vmul.f32 %v1057_v60, %v230_v17 }
 0x3b3   :  { %267 = vxpose.xlu0.b32.start.end [1/1] (short) (narrow) %v232_v18, 8 }
 0x3df   :  { %v249_v20 = vpop.trf.xlu1 }
 0x3e0   :  { %v265_v21 = vadd.f32 %v249_v20, %v231_v5 }
 0x3e2   :  { %v266_v23 = vmul.f32 0.5, %v265_v21 }
 0x3e4   :  { %v309_v24 = vmul.f32 0.5, %v266_v23 }
 0x3e6   :  { %v311_v26 = vsub.f32 %v988_v10, %v309_v24 }
 0x3e8   :  { %v321_v27 = vsel %vm195_vm7, %v311_v26, %v1032_v25 }
 0x3e9   :  { %351 = vperm.xlu2 %1034, %v321_v27   ;;  %v323_v28 = vperm.slane %v321_v27, 0 }
 0x3eb   :  { %1062 = vrcp.f32 %v323_v28 }
 0x3f1   :  { %v1063_v29 = vpop.eup %1062 }
 0x3f2   :  { %v329_v30 = vmul.f32 %v1063_v29, %v323_v28 }
 0x3f4   :  { %v331_v31 = vsub.f32 2.0, %v329_v30 }
 0x3f6   :  { %v333_v32 = vmul.f32 %v1063_v29, %v331_v31 }
 0x3f8   :  { %337 = vperm.xlu2 %1034, %v333_v32  }
 0x41a   :  { %1037 = vset.pattern.permute.xlu0 %v1186_v33 }
 0x443   :  { %v352_v34 = vpop.permute.xlu2 %351 }
 0x452   :  { %v338_v35 = vpop.permute.xlu2 %337 }
 0x453   :  { %v345_v36 = vmul.f32 %v338_v35, %v323_v28 }
 0x455   :  { %v359_v37 = vmul.f32 %v352_v34, %v345_v36 }
 0x457   :  { %v361_v38 = vsub.f32 %v321_v27, %v359_v37  ;;  %v283_v39 = vpop.trf.xlu0 }
 0x458   :  { %v299_v40 = vadd.f32 %v283_v39, %v232_v18  ;;  %v1188_v39 = vmov 3  }
 0x459   :  { %v367_v41 = vsel %vm347_vm10, %v345_v36, %v361_v38  ;;  %vm670_vm10 = vcmp.eq.s32.totalorder %v1295_v7, 7 }
 0x45a   :  { %v369_v42 = vperm.slane %v367_v41, 1  ;;  %v300_v44 = vmul.f32 0.5, %v299_v40 }
 0x45c   :  { %v310_v45 = vmul.f32 0.5, %v300_v44  ;;  %1064 = vrcp.f32 %v369_v42 }
 0x45e   :  { %v312_v47 = vsub.f32 %v989_v11, %v310_v45 }
 0x460   :  { %v322_v48 = vsel %vm195_vm7, %v312_v47, %v1033_v46 }
 0x461   :  { %v324_v49 = vperm.slane %v322_v48, 0 }
 0x462   :  { %v1065_v50 = vpop.eup %1064 }
 0x463   :  { %v375_v51 = vmul.f32 %v1065_v50, %v369_v42  ;;  %1066 = vrcp.f32 %v324_v49 }
 0x465   :  { %v377_v52 = vsub.f32 2.0, %v375_v51 }
 0x467   :  { %v379_v53 = vmul.f32 %v1065_v50, %v377_v52 }
 0x469   :  { %v1067_v54 = vpop.eup %1066  ;;  %383 = vperm.xlu1 %1035, %v379_v53  }
 0x46a   :  { %v330_v55 = vmul.f32 %v1067_v54, %v324_v49 }
 0x46c   :  { %v332_v56 = vsub.f32 2.0, %v330_v55 }
 0x46e   :  { %v334_v57 = vmul.f32 %v1067_v54, %v332_v56 }
 0x470   :  { %342 = vperm.xlu2 %1034, %v334_v57  }
 0x478   :  { %356 = vperm.xlu2 %1034, %v322_v48  }
 0x480   :  { %1036 = vset.pattern.permute.xlu2 %v1186_v33 }
 0x481   :  { %397 = vperm.xlu2 %1036, %v367_v41  }
 0x4ca   :  { %v343_v58 = vpop.permute.xlu2 %342 }
 0x4cb   :  { %v346_v59 = vmul.f32 %v343_v58, %v324_v49 }
 0x4d2   :  { %v357_v60 = vpop.permute.xlu2 %356 }
 0x4d3   :  { %v360_v61 = vmul.f32 %v357_v60, %v346_v59 }
 0x4d5   :  { %v362_v62 = vsub.f32 %v322_v48, %v360_v61 }
 0x4d7   :  { %v368_v63 = vsel %vm348_vm11, %v346_v59, %v362_v62 }
 0x4d8   :  { %402 = vperm.xlu2 %1036, %v368_v63   ;;  %v370_v0 = vperm.slane %v368_v63, 1 }
 0x4da   :  { %1068 = vrcp.f32 %v370_v0 }
 0x4db   :  { %v384_v1 = vpop.permute.xlu1 %383  ;;  %v398_v3 = vpop.permute.xlu2 %397 }
 0x4dc   :  { %v391_v2 = vmul.f32 %v384_v1, %v369_v42  ;;  %v1189_v42 = vmov 4  }
 0x4dd   :  { %1040 = vset.pattern.permute.xlu1 %v1189_v42 }
 0x4de   :  { %v405_v4 = vmul.f32 %v398_v3, %v391_v2 }
 0x4e0   :  { %v1069_v5 = vpop.eup %1068  ;;  %v407_v8 = vsub.f32 %v367_v41, %v405_v4  ;;  %1038 = vset.pattern.permute.xlu2 %v1187_v9 }
 0x4e1   :  { %v376_v10 = vmul.f32 %v1069_v5, %v370_v0 }
 0x4e2   :  { %v413_v11 = vsel %vm393_vm12, %v391_v2, %v407_v8 }
 0x4e3   :  { %443 = vperm.xlu2 %1038, %v413_v11   ;;  %v415_v12 = vperm.slane %v413_v11, 2  ;;  %v378_v13 = vsub.f32 2.0, %v376_v10 }
 0x4e5   :  { %1070 = vrcp.f32 %v415_v12  ;;  %v380_v14 = vmul.f32 %v1069_v5, %v378_v13 }
 0x4e7   :  { %388 = vperm.xlu0 %1037, %v380_v14  }
 0x4eb   :  { %v1071_v15 = vpop.eup %1070 }
 0x4ec   :  { %v421_v16 = vmul.f32 %v1071_v15, %v415_v12 }
 0x4ee   :  { %v423_v17 = vsub.f32 2.0, %v421_v16 }
 0x4f0   :  { %v425_v18 = vmul.f32 %v1071_v15, %v423_v17 }
 0x4f2   :  { %429 = vperm.xlu2 %1038, %v425_v18  }
 0x532   :  { %v403_v19 = vpop.permute.xlu2 %402 }
 0x53d   :  { %v444_v20 = vpop.permute.xlu2 %443 }
 0x54c   :  { %v430_v25 = vpop.permute.xlu2 %429 }
 0x54d   :  { %v437_v28 = vmul.f32 %v430_v25, %v415_v12  ;;  %v1190_v12 = vmov 5  }
 0x54f   :  { %v451_v29 = vmul.f32 %v444_v20, %v437_v28 }
 0x551   :  { %v453_v32 = vsub.f32 %v413_v11, %v451_v29 }
 0x553   :  { %v459_v35 = vsel %vm439_vm14, %v437_v28, %v453_v32 }
 0x554   :  { %v461_v36 = vperm.slane %v459_v35, 3 }
 0x559   :  { %v389_v21 = vpop.permute.xlu0 %388 }
 0x55a   :  { %v392_v22 = vmul.f32 %v389_v21, %v370_v0 }
 0x55c   :  { %v406_v23 = vmul.f32 %v403_v19, %v392_v22 }
 0x55e   :  { %v408_v24 = vsub.f32 %v368_v63, %v406_v23 }
 0x560   :  { %v414_v26 = vsel %vm394_vm13, %v392_v22, %v408_v24 }
 0x561   :  { %v416_v27 = vperm.slane %v414_v26, 2 }
 0x563   :  { %1072 = vrcp.f32 %v416_v27 }
 0x564   :  { %1074 = vrcp.f32 %v461_v36 }
 0x569   :  { %v1073_v30 = vpop.eup %1072 }
 0x56a   :  { %v422_v31 = vmul.f32 %v1073_v30, %v416_v27  ;;  %v1075_v37 = vpop.eup %1074 }
 0x56b   :  { %v467_v38 = vmul.f32 %v1075_v37, %v461_v36 }
 0x56c   :  { %v424_v33 = vsub.f32 2.0, %v422_v31 }
 0x56d   :  { %v469_v40 = vsub.f32 2.0, %v467_v38 }
 0x56e   :  { %v426_v34 = vmul.f32 %v1073_v30, %v424_v33 }
 0x56f   :  { %v471_v41 = vmul.f32 %v1075_v37, %v469_v40 }
 0x570   :  { %434 = vperm.xlu2 %1038, %v426_v34  }
 0x578   :  { %448 = vperm.xlu2 %1038, %v414_v26  }
 0x580   :  { %1039 = vset.pattern.permute.xlu2 %v1188_v39 }
 0x581   :  { %489 = vperm.xlu2 %1039, %v459_v35  }
 0x589   :  { %475 = vperm.xlu2 %1039, %v471_v41  }
 0x5ca   :  { %v435_v44 = vpop.permute.xlu2 %434 }
 0x5cb   :  { %v438_v45 = vmul.f32 %v435_v44, %v416_v27  ;;  %v1191_v27 = vmov 6  }
 0x5cc   :  { %1044 = vset.pattern.permute.xlu0 %v1191_v27 }
 0x5d2   :  { %v449_v46 = vpop.permute.xlu2 %448 }
 0x5d3   :  { %v452_v47 = vmul.f32 %v449_v46, %v438_v45 }
 0x5d5   :  { %v454_v48 = vsub.f32 %v414_v26, %v452_v47 }
 0x5d7   :  { %v460_v49 = vsel %vm440_vm15, %v438_v45, %v454_v48 }
 0x5d8   :  { %v462_v50 = vperm.slane %v460_v49, 3 }
 0x5da   :  { %1076 = vrcp.f32 %v462_v50 }
 0x5db   :  { %v490_v51 = vpop.permute.xlu2 %489 }
 0x5e0   :  { %v1077_v52 = vpop.eup %1076 }
 0x5e1   :  { %v468_v53 = vmul.f32 %v1077_v52, %v462_v50 }
 0x5e3   :  { %v476_v54 = vpop.permute.xlu2 %475  ;;  %v470_v55 = vsub.f32 2.0, %v468_v53 }
 0x5e4   :  { %v483_v56 = vmul.f32 %v476_v54, %v461_v36 }
 0x5e5   :  { %v472_v57 = vmul.f32 %v1077_v52, %v470_v55 }
 0x5e6   :  { %v497_v58 = vmul.f32 %v490_v51, %v483_v56  ;;  %v1192_v51 = vmov 7  }
 0x5e7   :  { %480 = vperm.xlu2 %1039, %v472_v57  }
 0x5e8   :  { %v499_v59 = vsub.f32 %v459_v35, %v497_v58 }
 0x5ea   :  { %v505_v60 = vsel %vm485_vm0, %v483_v56, %v499_v59 }
 0x5eb   :  { %535 = vperm.xlu1 %1040, %v505_v60   ;;  %v507_v61 = vperm.slane %v505_v60, 4 }
 0x5ed   :  { %1078 = vrcp.f32 %v507_v61 }
 0x5ef   :  { %494 = vperm.xlu2 %1039, %v460_v49  }
 0x5f3   :  { %v1079_v62 = vpop.eup %1078 }
 0x5f4   :  { %v513_v63 = vmul.f32 %v1079_v62, %v507_v61 }
 0x5f6   :  { %v515_v0 = vsub.f32 2.0, %v513_v63 }
 0x5f7   :  { %1041 = vset.pattern.permute.xlu2 %v1189_v42 }
 0x5f8   :  { %v517_v1 = vmul.f32 %v1079_v62, %v515_v0 }
 0x5fa   :  { %521 = vperm.xlu2 %1041, %v517_v1  }
 0x641   :  { %v481_v2 = vpop.permute.xlu2 %480 }
 0x642   :  { %v484_v3 = vmul.f32 %v481_v2, %v462_v50 }
 0x649   :  { %v495_v4 = vpop.permute.xlu2 %494 }
 0x64a   :  { %v498_v5 = vmul.f32 %v495_v4, %v484_v3 }
 0x64c   :  { %v500_v8 = vsub.f32 %v460_v49, %v498_v5 }
 0x64e   :  { %v506_v9 = vsel %vm486_vm1, %v484_v3, %v500_v8 }
 0x64f   :  { %540 = vperm.xlu1 %1040, %v506_v9   ;;  %v508_v10 = vperm.slane %v506_v9, 4 }
 0x651   :  { %1080 = vrcp.f32 %v508_v10 }
 0x654   :  { %v522_v14 = vpop.permute.xlu2 %521 }
 0x655   :  { %v529_v16 = vmul.f32 %v522_v14, %v507_v61 }
 0x657   :  { %v1081_v11 = vpop.eup %1080  ;;  %1042 = vset.pattern.permute.xlu1 %v1190_v12 }
 0x658   :  { %v514_v13 = vmul.f32 %v1081_v11, %v508_v10 }
 0x65a   :  { %v516_v15 = vsub.f32 2.0, %v514_v13 }
 0x65c   :  { %v518_v17 = vmul.f32 %v1081_v11, %v516_v15 }
 0x65d   :  { %v536_v18 = vpop.permute.xlu1 %535 }
 0x65e   :  { %v543_v19 = vmul.f32 %v536_v18, %v529_v16  ;;  %526 = vperm.xlu2 %1041, %v518_v17  }
 0x660   :  { %v545_v20 = vsub.f32 %v505_v60, %v543_v19 }
 0x662   :  { %v551_v21 = vsel %vm531_vm2, %v529_v16, %v545_v20  ;;  %vm936_vm2 = vcmask 0  }
 0x663   :  { %581 = vperm.xlu1 %1042, %v551_v21   ;;  %v553_v22 = vperm.slane %v551_v21, 5 }
 0x665   :  { %1082 = vrcp.f32 %v553_v22 }
 0x666   :  { %1043 = vset.pattern.permute.xlu2 %v1190_v12 }
 0x66b   :  { %v1083_v23 = vpop.eup %1082 }
 0x66c   :  { %v559_v24 = vmul.f32 %v1083_v23, %v553_v22 }
 0x66e   :  { %v561_v25 = vsub.f32 2.0, %v559_v24 }
 0x670   :  { %v563_v26 = vmul.f32 %v1083_v23, %v561_v25 }
 0x672   :  { %567 = vperm.xlu2 %1043, %v563_v26  }
 0x6b8   :  { %v527_v28 = vpop.permute.xlu2 %526 }
 0x6b9   :  { %v530_v29 = vmul.f32 %v527_v28, %v508_v10 }
 0x6c1   :  { %v541_v30 = vpop.permute.xlu1 %540 }
 0x6c2   :  { %v544_v31 = vmul.f32 %v541_v30, %v530_v29 }
 0x6c4   :  { %v546_v32 = vsub.f32 %v506_v9, %v544_v31 }
 0x6c6   :  { %v552_v33 = vsel %vm532_vm3, %v530_v29, %v546_v32 }
 0x6c7   :  { %586 = vperm.xlu1 %1042, %v552_v33   ;;  %v554_v34 = vperm.slane %v552_v33, 5 }
 0x6c9   :  { %1084 = vrcp.f32 %v554_v34 }
 0x6cc   :  { %v568_v37 = vpop.permute.xlu2 %567 }
 0x6cd   :  { %v575_v39 = vmul.f32 %v568_v37, %v553_v22 }
 0x6cf   :  { %v1085_v35 = vpop.eup %1084  ;;  %1046 = vset.pattern.permute.xlu1 %v1191_v27 }
 0x6d0   :  { %v560_v36 = vmul.f32 %v1085_v35, %v554_v34 }
 0x6d2   :  { %v562_v38 = vsub.f32 2.0, %v560_v36 }
 0x6d4   :  { %v564_v40 = vmul.f32 %v1085_v35, %v562_v38 }
 0x6d5   :  { %v582_v41 = vpop.permute.xlu1 %581 }
 0x6d6   :  { %v589_v42 = vmul.f32 %v582_v41, %v575_v39  ;;  %572 = vperm.xlu2 %1043, %v564_v40  }
 0x6d8   :  { %v591_v44 = vsub.f32 %v551_v21, %v589_v42 }
 0x6da   :  { %v597_v45 = vsel %vm577_vm4, %v575_v39, %v591_v44 }
 0x6db   :  { %627 = vperm.xlu0 %1044, %v597_v45   ;;  %v599_v46 = vperm.slane %v597_v45, 6 }
 0x6dd   :  { %1086 = vrcp.f32 %v599_v46 }
 0x6de   :  { %1045 = vset.pattern.permute.xlu2 %v1191_v27 }
 0x6e3   :  { %v1087_v47 = vpop.eup %1086  ;;  %1049 = vset.pattern.permute.xlu0 %v1192_v51 }
 0x6e4   :  { %v605_v48 = vmul.f32 %v1087_v47, %v599_v46 }
 0x6e6   :  { %v607_v49 = vsub.f32 2.0, %v605_v48 }
 0x6e8   :  { %v609_v50 = vmul.f32 %v1087_v47, %v607_v49 }
 0x6ea   :  { %613 = vperm.xlu2 %1045, %v609_v50  }
 0x730   :  { %v573_v52 = vpop.permute.xlu2 %572 }
 0x731   :  { %v576_v53 = vmul.f32 %v573_v52, %v554_v34 }
 0x739   :  { %v587_v54 = vpop.permute.xlu1 %586 }
 0x73a   :  { %v590_v55 = vmul.f32 %v587_v54, %v576_v53 }
 0x73c   :  { %v592_v56 = vsub.f32 %v552_v33, %v590_v55 }
 0x73e   :  { %v598_v57 = vsel %vm578_vm5, %v576_v53, %v592_v56 }
 0x73f   :  { %632 = vperm.xlu2 %1045, %v598_v57   ;;  %v600_v58 = vperm.slane %v598_v57, 6 }
 0x741   :  { %1088 = vrcp.f32 %v600_v58 }
 0x744   :  { %v614_v61 = vpop.permute.xlu2 %613 }
 0x745   :  { %v621_v63 = vmul.f32 %v614_v61, %v599_v46 }
 0x747   :  { %v1089_v59 = vpop.eup %1088  ;;  %1047 = vset.pattern.permute.xlu2 %v1192_v51 }
 0x748   :  { %v606_v60 = vmul.f32 %v1089_v59, %v600_v58 }
 0x74a   :  { %v608_v62 = vsub.f32 2.0, %v606_v60 }
 0x74c   :  { %v610_v0 = vmul.f32 %v1089_v59, %v608_v62 }
 0x74d   :  { %v628_v1 = vpop.permute.xlu0 %627 }
 0x74e   :  { %v635_v2 = vmul.f32 %v628_v1, %v621_v63  ;;  %618 = vperm.xlu1 %1046, %v610_v0  }
 0x750   :  { %v637_v3 = vsub.f32 %v597_v45, %v635_v2 }
 0x752   :  { %v643_v4 = vsel %vm623_vm6, %v621_v63, %v637_v3 }
 0x753   :  { %673 = vperm.xlu2 %1047, %v643_v4   ;;  %v645_v5 = vperm.slane %v643_v4, 7 }
 0x755   :  { %1090 = vrcp.f32 %v645_v5 }
 0x756   :  { %1048 = vset.pattern.permute.xlu1 %v1192_v51 }
 0x75b   :  { %v1091_v8 = vpop.eup %1090 }
 0x75c   :  { %v651_v9 = vmul.f32 %v1091_v8, %v645_v5 }
 0x75e   :  { %v653_v10 = vsub.f32 2.0, %v651_v9 }
 0x760   :  { %v655_v11 = vmul.f32 %v1091_v8, %v653_v10 }
 0x762   :  { %659 = vperm.xlu1 %1048, %v655_v11  }
 0x799   :  { %v633_v14 = vpop.permute.xlu2 %632 }
 0x7ad   :  { %v674_v25 = vpop.permute.xlu2 %673 }
 0x7c0   :  { %v619_v12 = vpop.permute.xlu1 %618 }
 0x7c1   :  { %v622_v13 = vmul.f32 %v619_v12, %v600_v58 }
 0x7c3   :  { %v636_v15 = vmul.f32 %v633_v14, %v622_v13 }
 0x7c5   :  { %v638_v16 = vsub.f32 %v598_v57, %v636_v15  ;;  %v859_v15 = vstv %s858_s23 }
 0x7c7   :  { %v644_v17 = vsel %vm624_vm8, %v622_v13, %v638_v16  ;;  %v1340_v16 = vstv %s973_s22 }
 0x7c8   :  { %678 = vperm.xlu1 %1048, %v644_v17   ;;  %v646_v18 = vperm.slane %v644_v17, 7  ;;  %vm923_vm14 = vweird.f32 %v1340_v16 }
 0x7ca   :  { %1092 = vrcp.f32 %v646_v18 }
 0x7d0   :  { %v1093_v19 = vpop.eup %1092 }
 0x7d1   :  { %v652_v20 = vmul.f32 %v1093_v19, %v646_v18 }
 0x7d3   :  { %v654_v21 = vsub.f32 2.0, %v652_v20 }
 0x7d4   :  { %v660_v22 = vpop.permute.xlu1 %659 }
 0x7d5   :  { %v667_v23 = vmul.f32 %v660_v22, %v645_v5  ;;  %v656_v24 = vmul.f32 %v1093_v19, %v654_v21 }
 0x7d7   :  { %v681_v26 = vmul.f32 %v674_v25, %v667_v23  ;;  %664 = vperm.xlu0 %1049, %v656_v24  }
 0x7d9   :  { %v683_v27 = vsub.f32 %v643_v4, %v681_v26 }
 0x7db   :  { %v689_v28 = vsel %vm669_vm9, %v667_v23, %v683_v27  ;;  %v857_v23 = vld [vmem:[%s1363_s2] sm:$0xff]  ;;  %s1193_s2 = smov [#allocation6]  }
 0x7dc   :  { %v691_v29 = vmul.f32 0.5, %v689_v28  ;;  %v863_v26 = vsub.f32 1.0, %v857_v23  ;;  %s954_s3 = sshll.u32 %s1193_s2, 4  ;;  %s955_s3 = int_to_ptr.vmem [resolvable:$true] %s954_s3 }
 0x7de   :  { %694 = vrot.lane.b32.xlu2 %v691_v29, %s1182_s19 }
 0x838   :  { %v695_v30 = vpop.permute.xlu2 %694 }
 0x839   :  { %697 = vxpose.xlu2.b32.start.end [1/1] (short) (narrow) %v695_v30, 8 }
 0x83a   :  { %v679_v33 = vpop.permute.xlu1 %678 }
 0x849   :  { %v665_v31 = vpop.permute.xlu0 %664 }
 0x84a   :  { %v668_v32 = vmul.f32 %v665_v31, %v646_v18 }
 0x84c   :  { %v682_v34 = vmul.f32 %v679_v33, %v668_v32 }
 0x84e   :  { %v684_v35 = vsub.f32 %v644_v17, %v682_v34 }
 0x850   :  { %v690_v36 = vsel %vm670_vm10, %v668_v32, %v684_v35 }
 0x851   :  { %v692_v37 = vmul.f32 0.5, %v690_v36 }
 0x853   :  { %736 = vrot.lane.b32.xlu1 %v692_v37, %s1182_s19 }
 0x8c5   :  { %v737_v38 = vpop.permute.xlu1 %736 }
 0x8c6   :  { %739 = vxpose.xlu0.b32.start.end [1/1] (short) (narrow) %v737_v38, 8 }
 0x8d2   :  { %v713_v6 = vpop.trf.xlu2 }
 0x8d3   :  { %730 = vrot.lane.b32.xlu1 %v713_v6, %s1184_s20 }
 0x945   :  { %v731_v39 = vpop.permute.xlu1 %730 }
 0x946   :  { %v733_v41 = vadd.f32 %v731_v39, %v691_v29 }
 0x948   :  { %v734_v42 = vmul.f32 0.5, %v733_v41 }
 0x96a   :  { %v755_v40 = vpop.trf.xlu0 }
 0x96b   :  { %772 = vrot.lane.b32.xlu1 %v755_v40, %s1184_s20 }
 0x973   :  { %779 = vrot.lane.b32.xlu1 %v734_v42, %s1182_s19 }
 0x9dd   :  { %v773_v44 = vpop.permute.xlu1 %772 }
 0x9de   :  { %v775_v7 = vadd.f32 %v773_v44, %v692_v37  ;;  %v895_v44 = vstv %s1337_s21 }
 0x9e0   :  { %v776_v45 = vmul.f32 0.5, %v775_v7 }
 0x9e2   :  { %781 = vrot.lane.b32.xlu1 %v776_v45, %s1182_s19 }
 0x9e5   :  { %v780_v46 = vpop.permute.xlu1 %779 }
 0x9e6   :  { %v785_v47 = vsel %vm195_vm7, %v780_v46, 0.0 }
 0x9e7   :  { %786 = vadd.xlane.f32.xlu0 %v785_v47 }
 0xa54   :  { %v782_v48 = vpop.permute.xlu1 %781 }
 0xa55   :  { %v788_v49 = vsel %vm195_vm7, %v782_v48, 0.0 }
 0xa56   :  { %789 = vadd.xlane.f32.xlu2 %v788_v49 }
 0xa5a   :  { %v787_v50 = vpop.xlane.xlu0 %786 }
 0xa5b   :  { %1094 = vrcp.f32 %v787_v50 }
 0xa61   :  { %v1095_v51 = vpop.eup %1094 }
 0xa62   :  { %v793_v52 = vmul.f32 %v1095_v51, %v787_v50 }
 0xa64   :  { %v795_v53 = vsub.f32 2.0, %v793_v52 }
 0xa66   :  { %v797_v54 = vmul.f32 %v1095_v51, %v795_v53  ;;  %v907_v51 = vand.u32 2147483648, %v895_v44  ;;  %v905_v53 = vand.u32 2147483647, %v895_v44 }
 0xa68   :  { %v799_v55 = vmul.f32 %v797_v54, %v734_v42  ;;  %vm906_vm13 = vcmp.eq.f32.partialorder %v905_v53, 8.507059e+37 }
 0xa6a   :  { %v801_v56 = vadd.f32 1e-07, %v799_v55 }
 0xa6c   :  { %1096 = vlog2.f32 %v801_v56 }
 0xa72   :  { %v1097_v57 = vpop.eup %1096 }
 0xa73   :  { %v804_v58 = vmul.f32 0.6931472, %v1097_v57 }
 0xa75   :  { %817 = vrot.lane.b32.xlu1 %v804_v58, %s1182_s19 }
 0xac9   :  { %v790_v59 = vpop.xlane.xlu2 %789 }
 0xaca   :  { %1098 = vrcp.f32 %v790_v59 }
 0xad0   :  { %v1099_v60 = vpop.eup %1098 }
 0xad1   :  { %v794_v61 = vmul.f32 %v1099_v60, %v790_v59 }
 0xad3   :  { %v796_v62 = vsub.f32 2.0, %v794_v61 }
 0xad5   :  { %v798_v63 = vmul.f32 %v1099_v60, %v796_v62  ;;  %v929_v62 = vand.u32 2147483648, %v1340_v16 }
 0xad7   :  { %v800_v0 = vmul.f32 %v798_v63, %v776_v45 }
 0xad9   :  { %v802_v1 = vadd.f32 1e-07, %v800_v0 }
 0xadb   :  { %1100 = vlog2.f32 %v802_v1  ;;  %v930_v1 = vor.u32 1.1754944e-38, %v929_v62 }
 0xae1   :  { %v1101_v2 = vpop.eup %1100 }
 0xae2   :  { %v806_v3 = vmul.f32 0.6931472, %v1101_v2 }
 0xae4   :  { %815 = vrot.lane.b32.xlu1 %v806_v3, %s1182_s19 }
 0xae7   :  { %v818_v4 = vpop.permute.xlu1 %817 }
 0xae8   :  { %990 = vmatpush.xpose.msk.msra.mxu2 %vm195_vm7, %v818_v4 }
 0xaec   :  { %809 = vrot.lane.b32.xlu1 %v799_v55, %s1182_s19  ;;  %v908_v55 = vor.u32 1.1754944e-38, %v907_v51 }
 0xaf4   :  { %811 = vrot.lane.b32.xlu1 %v800_v0, %s1182_s19  ;;  %v927_v0 = vand.u32 2147483647, %v1340_v16 }
 0xaf6   :  { %vm928_vm1 = vcmp.eq.f32.partialorder %v927_v0, 8.507059e+37 }
 0xb56   :  { %v816_v5 = vpop.permute.xlu1 %815 }
 0xb57   :  { %991 = vmatpush.xpose.msk.msra.mxu2 %vm195_vm7, %v816_v5 }
 0xb5e   :  { %v810_v8 = vpop.permute.xlu1 %809 }
 0xb5f   :  { %992 = vmatmul.msk.f32.vlgmr.msra.gmra.mxu2 %vm195_vm7, %v810_v8 }
 0xb66   :  { %v812_v9 = vpop.permute.xlu1 %811 }
 0xb67   :  { %993 = vmatmul.msk.f32.gmra.mxu2 %vm195_vm7, %v812_v9 }
 0xbe2   :  { %v844_v10 = vpop.f32.mrf.mxu2 }
 0xbea   :  { %v847_v11 = vpop.f32.mrf.mxu2 }
 0xbeb   :  { %851 = vrot.lane.b32.xlu1 %v847_v11, %s1182_s19 }
 0xbf3   :  { %192 = vrot.lane.b32.xlu1 %v1285_v43, %s1182_s19 }
 0xc5d   :  { %v852_v12 = vpop.permute.xlu1 %851 }
 0xc5e   :  { %v854_v13 = vadd.f32 %v852_v12, %v844_v10 }
 0xc60   :  { %v855_v14 = vmul.f32 0.5, %v854_v13 }
 0xc65   :  { %v193_v17 = vpop.permute.xlu1 %192 }
 0xc66   :  { %v856_v18 = vadd.f32 %v855_v14, %v193_v17  ;;  %196 = vst.msk [vmem:[#allocation6] sm:$0xff] %vm195_vm7, %v193_v17 }
 0xc67   :  { %959 = dma.vmem_to_hbm [thread:$0]  %s955_s3, 128, %s957_s28, [#allocation7]  }
 0xc68   :  { %v860_v19 = vmul.f32 %v859_v15, %v856_v18  ;;  %v862_v20 = vmul.f32 %v1340_v16, %v856_v18 }
 0xc6a   :  { %v864_v21 = vmul.f32 1.442695, %v860_v19  ;;  %v866_v43 = vmul.f32 1.442695, %v862_v20 }
 0xc6c   :  { %1102 = vpow2.f32 %v864_v21 }
 0xc6d   :  { %1104 = vpow2.f32 %v866_v43 }
 0xc6e   :  { %1106 = vrcp.f32 %v895_v44 }
 0xc6f   :  { %1108 = vrcp.f32 %v1340_v16 }
 0xc72   :  { %v1103_v22 = vpop.eup %1102 }
 0xc73   :  { %v868_v24 = vmul.f32 %v1103_v22, %v857_v23  ;;  %v1105_v27 = vpop.eup %1104 }
 0xc74   :  { %v869_v28 = vmul.f32 %v1105_v27, %v863_v26  ;;  %v1107_v7 = vpop.eup %1106 }
 0xc75   :  { %v870_v25 = vsel %vm195_vm7, %v868_v24, 0.0  ;;  %v897_v45 = vmul.f32 %v1107_v7, %v895_v44  ;;  %v1109_v47 = vpop.eup %1108  ;;  %vm902_vm11 = vweird.f32 %v1107_v7 }
 0xc76   :  { %871 = vadd.xlane.f32.xlu1 %v870_v25  ;;  %v880_v29 = vsel %vm195_vm7, %v869_v28, 0.0  ;;  %v919_v49 = vmul.f32 %v1109_v47, %v1340_v16  ;;  %vm901_vm7 = vweird.f32 %v895_v44  ;;  %vm924_vm15 = vweird.f32 %v1109_v47 }
 0xc77   :  { %v898_v46 = vsub.f32 1.0, %v897_v45  ;;  %vm903_vm12 = vmor %vm901_vm7, %vm902_vm11 }
 0xc78   :  { %v920_v54 = vsub.f32 1.0, %v919_v49  ;;  %vm925_vm0 = vmor %vm923_vm14, %vm924_vm15 }
 0xc79   :  { %v899_v48 = vmul.f32 %v1107_v7, %v898_v46 }
 0xc7a   :  { %v921_v57 = vmul.f32 %v1109_v47, %v920_v54 }
 0xc7b   :  { %v900_v52 = vadd.f32 %v1107_v7, %v899_v48 }
 0xc7c   :  { %v922_v63 = vadd.f32 %v1109_v47, %v921_v57 }
 0xc7d   :  { %v904_v56 = vsel %vm903_vm12, %v1107_v7, %v900_v52 }
 0xc7e   :  { %881 = vadd.xlane.f32.xlu1 %v880_v29  ;;  %v909_v61 = vsel %vm906_vm13, %v908_v55, %v904_v56  ;;  %v926_v2 = vsel %vm925_vm0, %v1109_v47, %v922_v63 }
 0xc7f   :  { %v931_v5 = vsel %vm928_vm1, %v930_v1, %v926_v2 }
 0xce9   :  { %v872_v30 = vpop.xlane.xlu1 %871 }
 0xcea   :  { %v873_v31 = vrot.slane %v872_v30, 4 }
 0xcec   :  { %v874_v32 = vadd.f32 %v873_v31, %v872_v30 }
 0xcee   :  { %v875_v33 = vrot.slane %v874_v32, 2 }
 0xcf0   :  { %v876_v34 = vadd.f32 %v875_v33, %v874_v32 }
 0xcf1   :  { %v882_v35 = vpop.xlane.xlu1 %881 }
 0xcf2   :  { %v883_v36 = vrot.slane %v882_v35, 4  ;;  %v877_v37 = vrot.slane %v876_v34, 1 }
 0xcf4   :  { %v884_v38 = vadd.f32 %v883_v36, %v882_v35  ;;  %v878_v6 = vadd.f32 %v877_v37, %v876_v34 }
 0xcf6   :  { %v885_v39 = vrot.slane %v884_v38, 2  ;;  %1002 = vpush %v878_v6 }
 0xcf8   :  { %v886_v40 = vadd.f32 %v885_v39, %v884_v38 }
 0xcfa   :  { %v887_v41 = vrot.slane %v886_v40, 1 }
 0xcfc   :  { %v888_v42 = vadd.f32 %v887_v41, %v886_v40 }
 0xcfe   :  { %1004 = vpush %v888_v42 }
 0xd27   :  { %s1003_s29 = spop %1002 }
 0xd28   :  { %s890_s5 = sadd.f32 1.0, %s1003_s29 }
 0xd2a   :  { %v891_v50 = vstv %s890_s5 }
 0xd2b   :  { %1110 = vlog2.f32 %v891_v50 }
 0xd2f   :  { %s1005_s30 = spop %1004 }
 0xd30   :  { %s912_s6 = sadd.f32 1.0, %s1005_s30 }
 0xd31   :  { %v1111_v58 = vpop.eup %1110 }
 0xd32   :  { %v913_v59 = vstv %s912_s6  ;;  %v893_v60 = vmul.f32 0.6931472, %v1111_v58 }
 0xd33   :  { %1112 = vlog2.f32 %v913_v59 }
 0xd34   :  { %1006 = vpush %v893_v60 }
 0xd35   :  { %1008 = vpush %v909_v61 }
 0xd39   :  { %v1113_v3 = vpop.eup %1112 }
 0xd3a   :  { %v915_v4 = vmul.f32 0.6931472, %v1113_v3 }
 0xd3c   :  { %1010 = vpush %v915_v4 }
 0xd3d   :  { %1012 = vpush %v931_v5 }
 0xd65   :  { %s1007_s7 = spop %1006 }
 0xd66   :  { %s1009_s8 = spop %1008 }
 0xd67   :  { %s911_s12 = smul.f32 %s1009_s8, %s1007_s7 }
 0xd6d   :  { %s1011_s9 = spop %1010 }
 0xd6e   :  { %s1013_s13 = spop %1012 }
 0xd6f   :  { %s933_s14 = smul.f32 %s1013_s13, %s1011_s9 }
 0xd71   :  { %s934_s18 = sadd.f32 %s933_s14, %s911_s12 }
 0xd73   :  { %v935_v8 = vstv %s934_s18 }
 0xd74   :  { %937 = vst.msk [vmem:[#allocation5] sm:$0x1] %vm936_vm2, %v935_v8 }
 0xd75   :  { %948 = dma.vmem_to_hbm [thread:$0]  %s944_s11, 16, %s946_s17, [#allocation3]  }
 0xd76   :  { %1176 = dma.done.wait [#allocation3], 16  }
 0xd77   :  { %1177 = vsyncadd [#allocation3], 4294967280 }
 0xd78   :  { %1178 = dma.done.wait [#allocation7], 128  }
 0xd79   :  { %1179 = vsyncadd [#allocation7], 4294967168 }
 0xd7a   :  { %968 = vsyncpa [#allocation3], 1 }
 0xd7b   :  { %969 = vsyncpa [#allocation7], 1 }
 0xd7c   :  { %970 = vsyncpa [#allocation4], 1 }

</bundles_post_ra>
